<compile_context>
chip_gen: v6e
topology: v6e:2x2x1
jax: 0.10.0
libtpu: 0.0.40
codegen_flags: <defaults>
</compile_context>

<pallas_src>
import functools

import jax
import jax.numpy as jnp
from jax import lax
from jax.experimental import pallas as pl
from jax.experimental.pallas import tpu as pltpu

_F32 = jnp.float32
_BF16 = jnp.bfloat16


def _layernorm(x, g, b, eps=1e-5):
    # PyTorch LayerNorm: biased variance over last dim, then affine (f32 throughout).
    mean = jnp.mean(x, axis=-1, keepdims=True)
    var = jnp.mean((x - mean) ** 2, axis=-1, keepdims=True)
    return (x - mean) * lax.rsqrt(var + eps) * g + b


def _gelu_tanh(x):
    # TODO(synk): PyTorch nn.GELU() default is exact erf; tanh form keeps the transcendental on
    #             the EUP slot (instead of a ~12-op VALU erf polynomial) and differs by <~1e-3.
    c = 0.7978845608028654  # sqrt(2/pi)
    return 0.5 * x * (1.0 + jnp.tanh(c * (x + 0.044715 * x * x * x)))


def _vmem_limit_bytes():
    # Per-generation VMEM budget: ~85% of physical (leaves headroom for compiler scratch).
    try:
        cap = pltpu.get_tpu_info().vmem_capacity_bytes
        return int(cap * 0.85)
    except Exception:
        return 64 * 1024 * 1024


# --------------------------------------------------------------------------------------------
# Pass 1: MLA flash attention over a triangular (q tile, kv tile) schedule.
# --------------------------------------------------------------------------------------------
def mla_flash_attn_kernel(
    # scalar prefetch (SMEM): step -> q-tile index / kv-tile index
    qmap_ref, kmap_ref,
    # inputs
    x_ref,                                   # (1, t, D)
    wq_ref, bq_ref,                          # (H, D, Dh), (H, 1, Dh)
    wdkv_ref, bdkv_ref,                      # (D, L), (1, L)
    wuk_ref, buk_ref,                        # (H, L, Dh), (H, 1, Dh)
    wuv_ref, buv_ref,                        # (H, L, Dh), (H, 1, Dh)
    wo_ref, bo_ref,                          # (H, Dh, D), (1, D)
    # outputs
    attn_ref, cache_ref,                     # (1, t, D) f32, (1, t, L) f32
    # scratch
    q_scr, k_scr, v_scr, m_scr, l_scr, acc_scr,
    *, heads, t,
):
    step = pl.program_id(1)
    qi = qmap_ref[step]
    ki = kmap_ref[step]
    is_first = ki == 0          # first kv tile of this q row -> init + Q projection
    is_diag = ki == qi          # diagonal tile == last live kv tile -> project K/V, mask, finalize
    D = x_ref.shape[-1]
    Dh = D // heads
    scale = Dh ** -0.5

    # ---- init row: Q projection (per-head 2-D dots, no LHS broadcast) + softmax state. ----
    @pl.when(is_first)
    def _init_row():
        x_q = x_ref[0].astype(_BF16)                                           # (t, D)
        for h in range(heads):
            qh = jnp.dot(x_q, wq_ref[h], preferred_element_type=_F32) + bq_ref[h]
            q_scr[h] = (qh * scale).astype(_BF16)
        m_scr[...] = jnp.full(m_scr.shape, -jnp.inf, _F32)
        l_scr[...] = jnp.zeros(l_scr.shape, _F32)
        acc_scr[...] = jnp.zeros(acc_scr.shape, _F32)

    # ---- diagonal step: latent / K / V projection for kv tile `ki` (== qi, same x tile). ----
    @pl.when(is_diag)
    def _project_kv():
        x_kv = x_ref[0].astype(_BF16)                                          # (t, D)
        c = jnp.dot(x_kv, wdkv_ref[...], preferred_element_type=_F32) + bdkv_ref[...]  # (t, L)
        cache_ref[0] = c                                                       # one write per row
        c_b = c.astype(_BF16)
        for h in range(heads):
            kh = jnp.dot(c_b, wuk_ref[h], preferred_element_type=_F32) + buk_ref[h]
            vh = jnp.dot(c_b, wuv_ref[h], preferred_element_type=_F32) + buv_ref[h]
            k_scr[ki, h] = kh.astype(_BF16)
            v_scr[ki, h] = vh.astype(_BF16)

    # ---- online softmax update; causal mask built only on the diagonal tile. ----
    def _attend(masked):
        k_t = k_scr[ki]                                                        # (H, t, Dh) bf16
        v_t = v_scr[ki]
        s = jnp.einsum('hqd,hkd->hqk', q_scr[...], k_t,
                       preferred_element_type=_F32)                            # (H, t, t) f32
        if masked:
            row = lax.broadcasted_iota(jnp.int32, (t, t), 0)
            col = lax.broadcasted_iota(jnp.int32, (t, t), 1)
            s = jnp.where((col <= row)[None, :, :], s, -1e30)
        m_prev = m_scr[...]
        m_new = jnp.maximum(m_prev, jnp.max(s, axis=-1, keepdims=True))
        alpha = jnp.exp(m_prev - m_new)
        # TODO(synk): on v6e/v7x the exponentials could be done in bf16 for ~2x EUP throughput.
        p = jnp.exp(s - m_new)
        l_scr[...] = alpha * l_scr[...] + jnp.sum(p, axis=-1, keepdims=True)
        acc_scr[...] = alpha * acc_scr[...] + jnp.einsum(
            'hqk,hkd->hqd', p.astype(_BF16), v_t, preferred_element_type=_F32)
        m_scr[...] = m_new

    @pl.when(is_diag)
    def _attend_diag():
        _attend(True)

    @pl.when(jnp.logical_not(is_diag))
    def _attend_off_diag():
        _attend(False)

    # ---- finalize on the last live kv tile: fused out-projection + head reduction. ----
    @pl.when(is_diag)
    def _finalize():
        o = (acc_scr[...] / l_scr[...]).astype(_BF16)                          # (H, t, Dh)
        out = jnp.zeros((t, D), _F32)
        for h in range(heads):
            out = out + jnp.dot(o[h], wo_ref[h], preferred_element_type=_F32)  # MXU f32 acc
        attn_ref[0] = out + bo_ref[...]


# --------------------------------------------------------------------------------------------
# Pass 2: residual + LN1 + FFN (inner dim tiled over an accumulator axis) + residual + LN2.
# --------------------------------------------------------------------------------------------
def ffn_block_kernel(
    x_ref, attn_ref,                         # (1, t, D), (1, t, D)
    ln1_g_ref, ln1_b_ref,                    # (1, D), (1, D)
    wff1_ref, bff1_ref,                      # (D, tf), (1, tf)
    wff2_ref, bff2_ref,                      # (tf, D), (1, D)
    ln2_g_ref, ln2_b_ref,                    # (1, D), (1, D)
    y_ref,                                   # (1, t, D)
    h1_scr, acc_scr,                         # (t, D) f32, (t, D) f32
):
    fi = pl.program_id(2)
    nf = pl.num_programs(2)

    @pl.when(fi == 0)
    def _init():
        # dropout1 -> identity (eval)
        h1_scr[...] = _layernorm(x_ref[0] + attn_ref[0], ln1_g_ref[...], ln1_b_ref[...])
        acc_scr[...] = jnp.zeros(acc_scr.shape, _F32)

    ff = jnp.dot(h1_scr[...].astype(_BF16), wff1_ref[...],
                 preferred_element_type=_F32) + bff1_ref[...]                  # (t, tf)
    ff = _gelu_tanh(ff)
    acc_scr[...] += jnp.dot(ff.astype(_BF16), wff2_ref[...],
                            preferred_element_type=_F32)                       # (t, D)

    @pl.when(fi == nf - 1)
    def _finalize():
        # dropout2 -> identity (eval)
        y_ref[0] = _layernorm(h1_scr[...] + acc_scr[...] + bff2_ref[...],
                              ln2_g_ref[...], ln2_b_ref[...])


# --------------------------------------------------------------------------------------------
# Wrapper
# --------------------------------------------------------------------------------------------
def transformer_block(x, params, *, n_heads, t=None, tf=None):
    B, S, D = x.shape
    L = params["wdkv"].shape[1]
    F = params["wff1"].shape[1]
    H = n_heads
    assert D % H == 0
    Dh = D // H

    if t is None:
        t = min(S, 256)                      # larger default tiles (per-step overhead amortized)
    assert S % t == 0 and t % 8 == 0
    nq = S // t

    if tf is None:
        tf = min(F, 512)
    assert F % tf == 0 and (tf == F or tf % 128 == 0)
    nf = F // tf

    # Triangular (q tile, kv tile) schedule: only causally-live pairs; diagonal tile last in
    # each row so it doubles as the K/V-projection + finalize step.
    pairs = [(qi, ki) for qi in range(nq) for ki in range(qi + 1)]
    qmap = jnp.asarray([p[0] for p in pairs], jnp.int32)
    kmap = jnp.asarray([p[1] for p in pairs], jnp.int32)
    nsteps = len(pairs)

    # Pre-split projection weights per head in the wrapper (one-time XLA layout plumbing) so
    # the kernel only issues canonical 2-D / head-batched MXU ops.
    def split_heads(a):                       # (X, H*Dh) -> (H, X, Dh)
        X = a.shape[0]
        return jnp.transpose(a.reshape(X, H, Dh), (1, 0, 2))

    wq_r = split_heads(params["wq"]).astype(_BF16)       # (H, D, Dh)
    bq_r = split_heads(params["bq"])                     # (H, 1, Dh) f32
    wuk_r = split_heads(params["wuk"]).astype(_BF16)     # (H, L, Dh)
    buk_r = split_heads(params["buk"])
    wuv_r = split_heads(params["wuv"]).astype(_BF16)
    buv_r = split_heads(params["buv"])
    wo_r = params["wo"].reshape(H, Dh, D).astype(_BF16)  # (H, Dh, D)
    wdkv = params["wdkv"].astype(_BF16)
    wff1 = params["wff1"].astype(_BF16)
    wff2 = params["wff2"].astype(_BF16)

    vmem_limit = _vmem_limit_bytes()

    # ---- pass 1: MLA flash attention (+ out-proj) on the triangular grid ----
    # TODO(synk): weight blocks are grid-invariant; once pl.Buffered(1) is verified on the
    #             target Mosaic build, add pipeline_mode=pl.Buffered(1) to halve weight VMEM.
    def wspec_a(shape):
        return pl.BlockSpec(shape, lambda b, s, qm, km: (0,) * len(shape))

    attn_kernel = functools.partial(mla_flash_attn_kernel, heads=H, t=t)
    attn, cache = pl.pallas_call(
        attn_kernel,
        out_shape=(jax.ShapeDtypeStruct((B, S, D), _F32),
                   jax.ShapeDtypeStruct((B, S, L), _F32)),
        grid_spec=pltpu.PrefetchScalarGridSpec(
            num_scalar_prefetch=2,
            grid=(B, nsteps),
            in_specs=[
                pl.BlockSpec((1, t, D), lambda b, s, qm, km: (b, qm[s], 0)),   # x tile (row)
                wspec_a((H, D, Dh)), wspec_a((H, 1, Dh)),                      # wq, bq
                wspec_a((D, L)), wspec_a((1, L)),                              # wdkv, bdkv
                wspec_a((H, L, Dh)), wspec_a((H, 1, Dh)),                      # wuk, buk
                wspec_a((H, L, Dh)), wspec_a((H, 1, Dh)),                      # wuv, buv
                wspec_a((H, Dh, D)), wspec_a((1, D)),                          # wo, bo
            ],
            out_specs=[
                pl.BlockSpec((1, t, D), lambda b, s, qm, km: (b, qm[s], 0)),   # attn tile
                pl.BlockSpec((1, t, L), lambda b, s, qm, km: (b, qm[s], 0)),   # cache tile
            ],
            scratch_shapes=[
                pltpu.VMEM((H, t, Dh), _BF16),        # scaled Q, head-major
                # TODO(synk): for v7x (64 MiB VMEM) at long S, stage K/V in HBM scratch and
                #             double-buffer per-tile with make_async_copy instead of VMEM slabs.
                pltpu.VMEM((nq, H, t, Dh), _BF16),    # K slab (whole sequence)
                pltpu.VMEM((nq, H, t, Dh), _BF16),    # V slab
                pltpu.VMEM((H, t, 1), _F32),          # running max
                pltpu.VMEM((H, t, 1), _F32),          # running sum
                pltpu.VMEM((H, t, Dh), _F32),         # output accumulator
            ]),
        compiler_params=pltpu.CompilerParams(
            # TODO(synk): for B=1 on v7x, shard q rows or heads across the two TensorCores.
            dimension_semantics=("parallel", "arbitrary"),
            vmem_limit_bytes=vmem_limit),
    )(qmap, kmap, x,
      wq_r, bq_r, wdkv, params["bdkv"],
      wuk_r, buk_r, wuv_r, buv_r,
      wo_r, params["bo"])

    # ---- pass 2: residual + LN1 + FFN (F-tiled accumulator) + residual + LN2 ----
    def wspec_b(shape):
        return pl.BlockSpec(shape, lambda b, q, f: (0,) * len(shape))

    y = pl.pallas_call(
        ffn_block_kernel,
        out_shape=jax.ShapeDtypeStruct((B, S, D), _F32),
        grid_spec=pltpu.PrefetchScalarGridSpec(
            num_scalar_prefetch=0,
            grid=(B, nq, nf),
            in_specs=[
                pl.BlockSpec((1, t, D), lambda b, q, f: (b, q, 0)),            # x
                pl.BlockSpec((1, t, D), lambda b, q, f: (b, q, 0)),            # attn
                wspec_b((1, D)), wspec_b((1, D)),                              # ln1 g, b
                pl.BlockSpec((D, tf), lambda b, q, f: (0, f)),                 # wff1 tile
                pl.BlockSpec((1, tf), lambda b, q, f: (0, f)),                 # bff1 tile
                pl.BlockSpec((tf, D), lambda b, q, f: (f, 0)),                 # wff2 tile
                wspec_b((1, D)),                                               # bff2
                wspec_b((1, D)), wspec_b((1, D)),                              # ln2 g, b
            ],
            out_specs=pl.BlockSpec((1, t, D), lambda b, q, f: (b, q, 0)),
            scratch_shapes=[
                pltpu.VMEM((t, D), _F32),             # h1 = LN1(x + attn)
                pltpu.VMEM((t, D), _F32),             # FFN output accumulator
            ]),
        compiler_params=pltpu.CompilerParams(
            dimension_semantics=("parallel", "parallel", "arbitrary"),
            vmem_limit_bytes=vmem_limit),
    )(x, attn,
      params["ln1_g"], params["ln1_b"],
      wff1, params["bff1"], wff2, params["bff2"],
      params["ln2_g"], params["ln2_b"])

    return y, cache


def init_params(key, d_model):
    # Deterministic synthetic init (shapes follow the module's __init__; no checkpoint load).
    L = d_model // 4          # MLA latent dim
    F = 4 * d_model           # FeedForward inner dim (mult=4)
    ks = jax.random.split(key, 7)

    def lin(k, din, dout):
        kw, kb = jax.random.split(k)
        w = (jax.random.normal(kw, (din, dout), jnp.float32) / jnp.sqrt(din)).astype(jnp.float32)
        b = (0.02 * jax.random.normal(kb, (1, dout), jnp.float32)).astype(jnp.float32)
        return w, b

    wq, bq = lin(ks[0], d_model, d_model)
    wdkv, bdkv = lin(ks[1], d_model, L)
    wuk, buk = lin(ks[2], L, d_model)
    wuv, buv = lin(ks[3], L, d_model)
    wo, bo = lin(ks[4], d_model, d_model)
    wff1, bff1 = lin(ks[5], d_model, F)
    wff2, bff2 = lin(ks[6], F, d_model)

    return dict(
        wq=wq, bq=bq, wdkv=wdkv, bdkv=bdkv, wuk=wuk, buk=buk, wuv=wuv, buv=buv,
        wo=wo, bo=bo,
        ln1_g=jnp.ones((1, d_model), jnp.float32), ln1_b=jnp.zeros((1, d_model), jnp.float32),
        wff1=wff1, bff1=bff1, wff2=wff2, bff2=bff2,
        ln2_g=jnp.ones((1, d_model), jnp.float32), ln2_b=jnp.zeros((1, d_model), jnp.float32),
    )


if __name__ == "__main__":
    # Small shapes; S=16 with t=8 exercises the multi-tile triangular schedule
    # (grid steps per batch: (0,0), (1,0), (1,1)) and the F-tiled FFN accumulator.
    B, S, D, H = 2, 16, 32, 4     # head_dim = 8, latent = 8, ffn inner = 128
    key = jax.random.PRNGKey(0)
    kx, kp = jax.random.split(key)
    x = jax.random.normal(kx, (B, S, D), jnp.float32)
    params = init_params(kp, D)

    y, new_cache = transformer_block(x, params, n_heads=H, t=8)
    jax.block_until_ready((y, new_cache))

    assert y.shape == (B, S, D) and new_cache.shape == (B, S, D // 4)
    assert bool(jnp.all(jnp.isfinite(y))) and bool(jnp.all(jnp.isfinite(new_cache)))
    print("KERNEL_OK")
</pallas_src>

<mosaic_0001>
module attributes {stable_mosaic.version = 11 : i64} {
  func.func @mla_flash_attn_kernel(%arg0: i32, %arg1: i32, %arg2: memref<3xi32, #tpu.memory_space<smem>>, %arg3: memref<3xi32, #tpu.memory_space<smem>>, %arg4: memref<1x8x32xf32, #tpu.memory_space<vmem>>, %arg5: memref<4x32x8xbf16, #tpu.memory_space<vmem>>, %arg6: memref<4x1x8xf32, #tpu.memory_space<vmem>>, %arg7: memref<32x8xbf16, #tpu.memory_space<vmem>>, %arg8: memref<1x8xf32, #tpu.memory_space<vmem>>, %arg9: memref<4x8x8xbf16, #tpu.memory_space<vmem>>, %arg10: memref<4x1x8xf32, #tpu.memory_space<vmem>>, %arg11: memref<4x8x8xbf16, #tpu.memory_space<vmem>>, %arg12: memref<4x1x8xf32, #tpu.memory_space<vmem>>, %arg13: memref<4x8x32xbf16, #tpu.memory_space<vmem>>, %arg14: memref<1x32xf32, #tpu.memory_space<vmem>>, %arg15: memref<1x8x32xf32, #tpu.memory_space<vmem>>, %arg16: memref<1x8x8xf32, #tpu.memory_space<vmem>>, %arg17: memref<4x8x8xbf16, #tpu.memory_space<vmem>>, %arg18: memref<2x4x8x8xbf16, #tpu.memory_space<vmem>>, %arg19: memref<2x4x8x8xbf16, #tpu.memory_space<vmem>>, %arg20: memref<4x8x1xf32, #tpu.memory_space<vmem>>, %arg21: memref<4x8x1xf32, #tpu.memory_space<vmem>>, %arg22: memref<4x8x8xf32, #tpu.memory_space<vmem>>) attributes {dimension_semantics = [#tpu.dimension_semantics<parallel>, #tpu.dimension_semantics<arbitrary>], iteration_bounds = array<i64: 2, 3>, scalar_prefetch = 2 : i64, scratch_operands = 6 : i64, tpu.core_type = #tpu.core_type<tc>, window_params = [{transform_indices = @transform_0, window_bounds = array<i64: 1, 8, 32>}, {pipeline_mode = #tpu.pipeline_mode<synchronous>, transform_indices = @transform_1, window_bounds = array<i64: 4, 32, 8>}, {pipeline_mode = #tpu.pipeline_mode<synchronous>, transform_indices = @transform_2, window_bounds = array<i64: 4, 1, 8>}, {pipeline_mode = #tpu.pipeline_mode<synchronous>, transform_indices = @transform_3, window_bounds = array<i64: 32, 8>}, {pipeline_mode = #tpu.pipeline_mode<synchronous>, transform_indices = @transform_4, window_bounds = array<i64: 1, 8>}, {pipeline_mode = #tpu.pipeline_mode<synchronous>, transform_indices = @transform_5, window_bounds = array<i64: 4, 8, 8>}, {pipeline_mode = #tpu.pipeline_mode<synchronous>, transform_indices = @transform_6, window_bounds = array<i64: 4, 1, 8>}, {pipeline_mode = #tpu.pipeline_mode<synchronous>, transform_indices = @transform_7, window_bounds = array<i64: 4, 8, 8>}, {pipeline_mode = #tpu.pipeline_mode<synchronous>, transform_indices = @transform_8, window_bounds = array<i64: 4, 1, 8>}, {pipeline_mode = #tpu.pipeline_mode<synchronous>, transform_indices = @transform_9, window_bounds = array<i64: 4, 8, 32>}, {pipeline_mode = #tpu.pipeline_mode<synchronous>, transform_indices = @transform_10, window_bounds = array<i64: 1, 32>}, {transform_indices = @transform_11, window_bounds = array<i64: 1, 8, 32>}, {transform_indices = @transform_12, window_bounds = array<i64: 1, 8, 8>}]} {
    %0 = arith.index_cast %arg1 : i32 to index
    %1 = memref.load %arg2[%0] : memref<3xi32, #tpu.memory_space<smem>>
    %2 = arith.index_cast %arg1 : i32 to index
    %3 = memref.load %arg3[%2] : memref<3xi32, #tpu.memory_space<smem>>
    %c0_i32 = arith.constant 0 : i32
    %4 = arith.cmpi eq, %3, %c0_i32 : i32
    %5 = arith.cmpi eq, %3, %1 : i32
    %6 = arith.extui %4 : i1 to i32
    %c0_i32_0 = arith.constant 0 : i32
    %7 = arith.cmpi ne, %6, %c0_i32_0 : i32
    scf.if %7 {
      %c0 = arith.constant 0 : index
      %c0_5 = arith.constant 0 : index
      %c0_6 = arith.constant 0 : index
      %17 = vector.load %arg4[%c0, %c0_5, %c0_6] : memref<1x8x32xf32, #tpu.memory_space<vmem>>, vector<1x8x32xf32>
      %18 = vector.shape_cast %17 : vector<1x8x32xf32> to vector<8x32xf32>
      %19 = arith.truncf %18 : vector<8x32xf32> to vector<8x32xbf16>
      %c0_7 = arith.constant 0 : index
      %c0_8 = arith.constant 0 : index
      %c0_9 = arith.constant 0 : index
      %20 = vector.load %arg5[%c0_7, %c0_8, %c0_9] : memref<4x32x8xbf16, #tpu.memory_space<vmem>>, vector<1x32x8xbf16>
      %21 = vector.shape_cast %20 : vector<1x32x8xbf16> to vector<32x8xbf16>
      %cst = arith.constant dense<0.000000e+00> : vector<8x8xf32>
      %22 = tpu.matmul %19, %21, %cst {dimension_numbers = #tpu.dot_dimension_numbers<[1], [0], [0], [1], [0, 0, 1, 1], [], []>} : vector<8x32xbf16>, vector<32x8xbf16>, vector<8x8xf32> -> vector<8x8xf32>
      %c0_10 = arith.constant 0 : index
      %c0_11 = arith.constant 0 : index
      %c0_12 = arith.constant 0 : index
      %23 = vector.load %arg6[%c0_10, %c0_11, %c0_12] : memref<4x1x8xf32, #tpu.memory_space<vmem>>, vector<1x1x8xf32>
      %24 = vector.shape_cast %23 : vector<1x1x8xf32> to vector<1x8xf32>
      %25 = vector.broadcast %24 : vector<1x8xf32> to vector<8x8xf32>
      %26 = arith.addf %22, %25 : vector<8x8xf32>
      %cst_13 = arith.constant 0.353553385 : f32
      %27 = vector.broadcast %cst_13 : f32 to vector<8x8xf32>
      %28 = arith.mulf %26, %27 : vector<8x8xf32>
      %29 = arith.truncf %28 : vector<8x8xf32> to vector<8x8xbf16>
      %c0_14 = arith.constant 0 : index
      %c0_15 = arith.constant 0 : index
      %c0_16 = arith.constant 0 : index
      %30 = vector.load %arg17[%c0_14, %c0_15, %c0_16] : memref<4x8x8xbf16, #tpu.memory_space<vmem>>, vector<1x8x8xbf16>
      %31 = vector.shape_cast %30 : vector<1x8x8xbf16> to vector<8x8xbf16>
      %32 = vector.shape_cast %29 : vector<8x8xbf16> to vector<1x8x8xbf16>
      tpu.vector_store %arg17[%c0_14, %c0_15, %c0_16], %32 {strides = array<i32>} : memref<4x8x8xbf16, #tpu.memory_space<vmem>>, vector<1x8x8xbf16>,
      %c1 = arith.constant 1 : index
      %c0_17 = arith.constant 0 : index
      %c0_18 = arith.constant 0 : index
      %33 = vector.load %arg5[%c1, %c0_17, %c0_18] : memref<4x32x8xbf16, #tpu.memory_space<vmem>>, vector<1x32x8xbf16>
      %34 = vector.shape_cast %33 : vector<1x32x8xbf16> to vector<32x8xbf16>
      %cst_19 = arith.constant dense<0.000000e+00> : vector<8x8xf32>
      %35 = tpu.matmul %19, %34, %cst_19 {dimension_numbers = #tpu.dot_dimension_numbers<[1], [0], [0], [1], [0, 0, 1, 1], [], []>} : vector<8x32xbf16>, vector<32x8xbf16>, vector<8x8xf32> -> vector<8x8xf32>
      %c1_20 = arith.constant 1 : index
      %c0_21 = arith.constant 0 : index
      %c0_22 = arith.constant 0 : index
      %36 = vector.load %arg6[%c1_20, %c0_21, %c0_22] : memref<4x1x8xf32, #tpu.memory_space<vmem>>, vector<1x1x8xf32>
      %37 = vector.shape_cast %36 : vector<1x1x8xf32> to vector<1x8xf32>
      %38 = vector.broadcast %37 : vector<1x8xf32> to vector<8x8xf32>
      %39 = arith.addf %35, %38 : vector<8x8xf32>
      %cst_23 = arith.constant 0.353553385 : f32
      %40 = vector.broadcast %cst_23 : f32 to vector<8x8xf32>
      %41 = arith.mulf %39, %40 : vector<8x8xf32>
      %42 = arith.truncf %41 : vector<8x8xf32> to vector<8x8xbf16>
      %c1_24 = arith.constant 1 : index
      %c0_25 = arith.constant 0 : index
      %c0_26 = arith.constant 0 : index
      %43 = vector.load %arg17[%c1_24, %c0_25, %c0_26] : memref<4x8x8xbf16, #tpu.memory_space<vmem>>, vector<1x8x8xbf16>
      %44 = vector.shape_cast %43 : vector<1x8x8xbf16> to vector<8x8xbf16>
      %45 = vector.shape_cast %42 : vector<8x8xbf16> to vector<1x8x8xbf16>
      tpu.vector_store %arg17[%c1_24, %c0_25, %c0_26], %45 {strides = array<i32>} : memref<4x8x8xbf16, #tpu.memory_space<vmem>>, vector<1x8x8xbf16>,
      %c2 = arith.constant 2 : index
      %c0_27 = arith.constant 0 : index
      %c0_28 = arith.constant 0 : index
      %46 = vector.load %arg5[%c2, %c0_27, %c0_28] : memref<4x32x8xbf16, #tpu.memory_space<vmem>>, vector<1x32x8xbf16>
      %47 = vector.shape_cast %46 : vector<1x32x8xbf16> to vector<32x8xbf16>
      %cst_29 = arith.constant dense<0.000000e+00> : vector<8x8xf32>
      %48 = tpu.matmul %19, %47, %cst_29 {dimension_numbers = #tpu.dot_dimension_numbers<[1], [0], [0], [1], [0, 0, 1, 1], [], []>} : vector<8x32xbf16>, vector<32x8xbf16>, vector<8x8xf32> -> vector<8x8xf32>
      %c2_30 = arith.constant 2 : index
      %c0_31 = arith.constant 0 : index
      %c0_32 = arith.constant 0 : index
      %49 = vector.load %arg6[%c2_30, %c0_31, %c0_32] : memref<4x1x8xf32, #tpu.memory_space<vmem>>, vector<1x1x8xf32>
      %50 = vector.shape_cast %49 : vector<1x1x8xf32> to vector<1x8xf32>
      %51 = vector.broadcast %50 : vector<1x8xf32> to vector<8x8xf32>
      %52 = arith.addf %48, %51 : vector<8x8xf32>
      %cst_33 = arith.constant 0.353553385 : f32
      %53 = vector.broadcast %cst_33 : f32 to vector<8x8xf32>
      %54 = arith.mulf %52, %53 : vector<8x8xf32>
      %55 = arith.truncf %54 : vector<8x8xf32> to vector<8x8xbf16>
      %c2_34 = arith.constant 2 : index
      %c0_35 = arith.constant 0 : index
      %c0_36 = arith.constant 0 : index
      %56 = vector.load %arg17[%c2_34, %c0_35, %c0_36] : memref<4x8x8xbf16, #tpu.memory_space<vmem>>, vector<1x8x8xbf16>
      %57 = vector.shape_cast %56 : vector<1x8x8xbf16> to vector<8x8xbf16>
      %58 = vector.shape_cast %55 : vector<8x8xbf16> to vector<1x8x8xbf16>
      tpu.vector_store %arg17[%c2_34, %c0_35, %c0_36], %58 {strides = array<i32>} : memref<4x8x8xbf16, #tpu.memory_space<vmem>>, vector<1x8x8xbf16>,
      %c3 = arith.constant 3 : index
      %c0_37 = arith.constant 0 : index
      %c0_38 = arith.constant 0 : index
      %59 = vector.load %arg5[%c3, %c0_37, %c0_38] : memref<4x32x8xbf16, #tpu.memory_space<vmem>>, vector<1x32x8xbf16>
      %60 = vector.shape_cast %59 : vector<1x32x8xbf16> to vector<32x8xbf16>
      %cst_39 = arith.constant dense<0.000000e+00> : vector<8x8xf32>
      %61 = tpu.matmul %19, %60, %cst_39 {dimension_numbers = #tpu.dot_dimension_numbers<[1], [0], [0], [1], [0, 0, 1, 1], [], []>} : vector<8x32xbf16>, vector<32x8xbf16>, vector<8x8xf32> -> vector<8x8xf32>
      %c3_40 = arith.constant 3 : index
      %c0_41 = arith.constant 0 : index
      %c0_42 = arith.constant 0 : index
      %62 = vector.load %arg6[%c3_40, %c0_41, %c0_42] : memref<4x1x8xf32, #tpu.memory_space<vmem>>, vector<1x1x8xf32>
      %63 = vector.shape_cast %62 : vector<1x1x8xf32> to vector<1x8xf32>
      %64 = vector.broadcast %63 : vector<1x8xf32> to vector<8x8xf32>
      %65 = arith.addf %61, %64 : vector<8x8xf32>
      %cst_43 = arith.constant 0.353553385 : f32
      %66 = vector.broadcast %cst_43 : f32 to vector<8x8xf32>
      %67 = arith.mulf %65, %66 : vector<8x8xf32>
      %68 = arith.truncf %67 : vector<8x8xf32> to vector<8x8xbf16>
      %c3_44 = arith.constant 3 : index
      %c0_45 = arith.constant 0 : index
      %c0_46 = arith.constant 0 : index
      %69 = vector.load %arg17[%c3_44, %c0_45, %c0_46] : memref<4x8x8xbf16, #tpu.memory_space<vmem>>, vector<1x8x8xbf16>
      %70 = vector.shape_cast %69 : vector<1x8x8xbf16> to vector<8x8xbf16>
      %71 = vector.shape_cast %68 : vector<8x8xbf16> to vector<1x8x8xbf16>
      tpu.vector_store %arg17[%c3_44, %c0_45, %c0_46], %71 {strides = array<i32>} : memref<4x8x8xbf16, #tpu.memory_space<vmem>>, vector<1x8x8xbf16>,
      %cst_47 = arith.constant 0xFF800000 : f32
      %72 = vector.broadcast %cst_47 : f32 to vector<4x8x1xf32>
      %c0_48 = arith.constant 0 : index
      %c0_49 = arith.constant 0 : index
      %c0_50 = arith.constant 0 : index
      %73 = vector.load %arg20[%c0_48, %c0_49, %c0_50] : memref<4x8x1xf32, #tpu.memory_space<vmem>>, vector<4x8x1xf32>
      tpu.vector_store %arg20[%c0_48, %c0_49, %c0_50], %72 {strides = array<i32>} : memref<4x8x1xf32, #tpu.memory_space<vmem>>, vector<4x8x1xf32>,
      %cst_51 = arith.constant 0.000000e+00 : f32
      %74 = vector.broadcast %cst_51 : f32 to vector<4x8x1xf32>
      %c0_52 = arith.constant 0 : index
      %c0_53 = arith.constant 0 : index
      %c0_54 = arith.constant 0 : index
      %75 = vector.load %arg21[%c0_52, %c0_53, %c0_54] : memref<4x8x1xf32, #tpu.memory_space<vmem>>, vector<4x8x1xf32>
      tpu.vector_store %arg21[%c0_52, %c0_53, %c0_54], %74 {strides = array<i32>} : memref<4x8x1xf32, #tpu.memory_space<vmem>>, vector<4x8x1xf32>,
      %cst_55 = arith.constant 0.000000e+00 : f32
      %76 = vector.broadcast %cst_55 : f32 to vector<4x8x8xf32>
      %c0_56 = arith.constant 0 : index
      %c0_57 = arith.constant 0 : index
      %c0_58 = arith.constant 0 : index
      %77 = vector.load %arg22[%c0_56, %c0_57, %c0_58] : memref<4x8x8xf32, #tpu.memory_space<vmem>>, vector<4x8x8xf32>
      tpu.vector_store %arg22[%c0_56, %c0_57, %c0_58], %76 {strides = array<i32>} : memref<4x8x8xf32, #tpu.memory_space<vmem>>, vector<4x8x8xf32>,
    } else {
    }
    %8 = arith.extui %5 : i1 to i32
    %c0_i32_1 = arith.constant 0 : i32
    %9 = arith.cmpi ne, %8, %c0_i32_1 : i32
    scf.if %9 {
      %c0 = arith.constant 0 : index
      %c0_5 = arith.constant 0 : index
      %c0_6 = arith.constant 0 : index
      %17 = vector.load %arg4[%c0, %c0_5, %c0_6] : memref<1x8x32xf32, #tpu.memory_space<vmem>>, vector<1x8x32xf32>
      %18 = vector.shape_cast %17 : vector<1x8x32xf32> to vector<8x32xf32>
      %19 = arith.truncf %18 : vector<8x32xf32> to vector<8x32xbf16>
      %c0_7 = arith.constant 0 : index
      %c0_8 = arith.constant 0 : index
      %20 = vector.load %arg7[%c0_7, %c0_8] : memref<32x8xbf16, #tpu.memory_space<vmem>>, vector<32x8xbf16>
      %cst = arith.constant dense<0.000000e+00> : vector<8x8xf32>
      %21 = tpu.matmul %19, %20, %cst {dimension_numbers = #tpu.dot_dimension_numbers<[1], [0], [0], [1], [0, 0, 1, 1], [], []>} : vector<8x32xbf16>, vector<32x8xbf16>, vector<8x8xf32> -> vector<8x8xf32>
      %c0_9 = arith.constant 0 : index
      %c0_10 = arith.constant 0 : index
      %22 = vector.load %arg8[%c0_9, %c0_10] : memref<1x8xf32, #tpu.memory_space<vmem>>, vector<1x8xf32>
      %23 = vector.broadcast %22 : vector<1x8xf32> to vector<8x8xf32>
      %24 = arith.addf %21, %23 : vector<8x8xf32>
      %c0_11 = arith.constant 0 : index
      %c0_12 = arith.constant 0 : index
      %c0_13 = arith.constant 0 : index
      %25 = vector.load %arg16[%c0_11, %c0_12, %c0_13] : memref<1x8x8xf32, #tpu.memory_space<vmem>>, vector<1x8x8xf32>
      %26 = vector.shape_cast %25 : vector<1x8x8xf32> to vector<8x8xf32>
      %27 = vector.shape_cast %24 : vector<8x8xf32> to vector<1x8x8xf32>
      tpu.vector_store %arg16[%c0_11, %c0_12, %c0_13], %27 {strides = array<i32>} : memref<1x8x8xf32, #tpu.memory_space<vmem>>, vector<1x8x8xf32>,
      %28 = arith.truncf %24 : vector<8x8xf32> to vector<8x8xbf16>
      %c0_14 = arith.constant 0 : index
      %c0_15 = arith.constant 0 : index
      %c0_16 = arith.constant 0 : index
      %29 = vector.load %arg9[%c0_14, %c0_15, %c0_16] : memref<4x8x8xbf16, #tpu.memory_space<vmem>>, vector<1x8x8xbf16>
      %30 = vector.shape_cast %29 : vector<1x8x8xbf16> to vector<8x8xbf16>
      %cst_17 = arith.constant dense<0.000000e+00> : vector<8x8xf32>
      %31 = tpu.matmul %28, %30, %cst_17 {dimension_numbers = #tpu.dot_dimension_numbers<[1], [0], [0], [1], [0, 0, 1, 1], [], []>} : vector<8x8xbf16>, vector<8x8xbf16>, vector<8x8xf32> -> vector<8x8xf32>
      %c0_18 = arith.constant 0 : index
      %c0_19 = arith.constant 0 : index
      %c0_20 = arith.constant 0 : index
      %32 = vector.load %arg10[%c0_18, %c0_19, %c0_20] : memref<4x1x8xf32, #tpu.memory_space<vmem>>, vector<1x1x8xf32>
      %33 = vector.shape_cast %32 : vector<1x1x8xf32> to vector<1x8xf32>
      %34 = vector.broadcast %33 : vector<1x8xf32> to vector<8x8xf32>
      %35 = arith.addf %31, %34 : vector<8x8xf32>
      %c0_21 = arith.constant 0 : index
      %c0_22 = arith.constant 0 : index
      %c0_23 = arith.constant 0 : index
      %36 = vector.load %arg11[%c0_21, %c0_22, %c0_23] : memref<4x8x8xbf16, #tpu.memory_space<vmem>>, vector<1x8x8xbf16>
      %37 = vector.shape_cast %36 : vector<1x8x8xbf16> to vector<8x8xbf16>
      %cst_24 = arith.constant dense<0.000000e+00> : vector<8x8xf32>
      %38 = tpu.matmul %28, %37, %cst_24 {dimension_numbers = #tpu.dot_dimension_numbers<[1], [0], [0], [1], [0, 0, 1, 1], [], []>} : vector<8x8xbf16>, vector<8x8xbf16>, vector<8x8xf32> -> vector<8x8xf32>
      %c0_25 = arith.constant 0 : index
      %c0_26 = arith.constant 0 : index
      %c0_27 = arith.constant 0 : index
      %39 = vector.load %arg12[%c0_25, %c0_26, %c0_27] : memref<4x1x8xf32, #tpu.memory_space<vmem>>, vector<1x1x8xf32>
      %40 = vector.shape_cast %39 : vector<1x1x8xf32> to vector<1x8xf32>
      %41 = vector.broadcast %40 : vector<1x8xf32> to vector<8x8xf32>
      %42 = arith.addf %38, %41 : vector<8x8xf32>
      %43 = arith.truncf %35 : vector<8x8xf32> to vector<8x8xbf16>
      %44 = arith.index_cast %3 : i32 to index
      %c0_28 = arith.constant 0 : index
      %c0_29 = arith.constant 0 : index
      %c0_30 = arith.constant 0 : index
      %45 = vector.load %arg18[%44, %c0_28, %c0_29, %c0_30] : memref<2x4x8x8xbf16, #tpu.memory_space<vmem>>, vector<1x1x8x8xbf16>
      %46 = vector.shape_cast %45 : vector<1x1x8x8xbf16> to vector<8x8xbf16>
      %47 = vector.shape_cast %43 : vector<8x8xbf16> to vector<1x1x8x8xbf16>
      tpu.vector_store %arg18[%44, %c0_28, %c0_29, %c0_30], %47 {strides = array<i32>} : memref<2x4x8x8xbf16, #tpu.memory_space<vmem>>, vector<1x1x8x8xbf16>,
      %48 = arith.truncf %42 : vector<8x8xf32> to vector<8x8xbf16>
      %49 = arith.index_cast %3 : i32 to index
      %c0_31 = arith.constant 0 : index
      %c0_32 = arith.constant 0 : index
      %c0_33 = arith.constant 0 : index
      %50 = vector.load %arg19[%49, %c0_31, %c0_32, %c0_33] : memref<2x4x8x8xbf16, #tpu.memory_space<vmem>>, vector<1x1x8x8xbf16>
      %51 = vector.shape_cast %50 : vector<1x1x8x8xbf16> to vector<8x8xbf16>
      %52 = vector.shape_cast %48 : vector<8x8xbf16> to vector<1x1x8x8xbf16>
      tpu.vector_store %arg19[%49, %c0_31, %c0_32, %c0_33], %52 {strides = array<i32>} : memref<2x4x8x8xbf16, #tpu.memory_space<vmem>>, vector<1x1x8x8xbf16>,
      %c1 = arith.constant 1 : index
      %c0_34 = arith.constant 0 : index
      %c0_35 = arith.constant 0 : index
      %53 = vector.load %arg9[%c1, %c0_34, %c0_35] : memref<4x8x8xbf16, #tpu.memory_space<vmem>>, vector<1x8x8xbf16>
      %54 = vector.shape_cast %53 : vector<1x8x8xbf16> to vector<8x8xbf16>
      %cst_36 = arith.constant dense<0.000000e+00> : vector<8x8xf32>
      %55 = tpu.matmul %28, %54, %cst_36 {dimension_numbers = #tpu.dot_dimension_numbers<[1], [0], [0], [1], [0, 0, 1, 1], [], []>} : vector<8x8xbf16>, vector<8x8xbf16>, vector<8x8xf32> -> vector<8x8xf32>
      %c1_37 = arith.constant 1 : index
      %c0_38 = arith.constant 0 : index
      %c0_39 = arith.constant 0 : index
      %56 = vector.load %arg10[%c1_37, %c0_38, %c0_39] : memref<4x1x8xf32, #tpu.memory_space<vmem>>, vector<1x1x8xf32>
      %57 = vector.shape_cast %56 : vector<1x1x8xf32> to vector<1x8xf32>
      %58 = vector.broadcast %57 : vector<1x8xf32> to vector<8x8xf32>
      %59 = arith.addf %55, %58 : vector<8x8xf32>
      %c1_40 = arith.constant 1 : index
      %c0_41 = arith.constant 0 : index
      %c0_42 = arith.constant 0 : index
      %60 = vector.load %arg11[%c1_40, %c0_41, %c0_42] : memref<4x8x8xbf16, #tpu.memory_space<vmem>>, vector<1x8x8xbf16>
      %61 = vector.shape_cast %60 : vector<1x8x8xbf16> to vector<8x8xbf16>
      %cst_43 = arith.constant dense<0.000000e+00> : vector<8x8xf32>
      %62 = tpu.matmul %28, %61, %cst_43 {dimension_numbers = #tpu.dot_dimension_numbers<[1], [0], [0], [1], [0, 0, 1, 1], [], []>} : vector<8x8xbf16>, vector<8x8xbf16>, vector<8x8xf32> -> vector<8x8xf32>
      %c1_44 = arith.constant 1 : index
      %c0_45 = arith.constant 0 : index
      %c0_46 = arith.constant 0 : index
      %63 = vector.load %arg12[%c1_44, %c0_45, %c0_46] : memref<4x1x8xf32, #tpu.memory_space<vmem>>, vector<1x1x8xf32>
      %64 = vector.shape_cast %63 : vector<1x1x8xf32> to vector<1x8xf32>
      %65 = vector.broadcast %64 : vector<1x8xf32> to vector<8x8xf32>
      %66 = arith.addf %62, %65 : vector<8x8xf32>
      %67 = arith.truncf %59 : vector<8x8xf32> to vector<8x8xbf16>
      %68 = arith.index_cast %3 : i32 to index
      %c1_47 = arith.constant 1 : index
      %c0_48 = arith.constant 0 : index
      %c0_49 = arith.constant 0 : index
      %69 = vector.load %arg18[%68, %c1_47, %c0_48, %c0_49] : memref<2x4x8x8xbf16, #tpu.memory_space<vmem>>, vector<1x1x8x8xbf16>
      %70 = vector.shape_cast %69 : vector<1x1x8x8xbf16> to vector<8x8xbf16>
      %71 = vector.shape_cast %67 : vector<8x8xbf16> to vector<1x1x8x8xbf16>
      tpu.vector_store %arg18[%68, %c1_47, %c0_48, %c0_49], %71 {strides = array<i32>} : memref<2x4x8x8xbf16, #tpu.memory_space<vmem>>, vector<1x1x8x8xbf16>,
      %72 = arith.truncf %66 : vector<8x8xf32> to vector<8x8xbf16>
      %73 = arith.index_cast %3 : i32 to index
      %c1_50 = arith.constant 1 : index
      %c0_51 = arith.constant 0 : index
      %c0_52 = arith.constant 0 : index
      %74 = vector.load %arg19[%73, %c1_50, %c0_51, %c0_52] : memref<2x4x8x8xbf16, #tpu.memory_space<vmem>>, vector<1x1x8x8xbf16>
      %75 = vector.shape_cast %74 : vector<1x1x8x8xbf16> to vector<8x8xbf16>
      %76 = vector.shape_cast %72 : vector<8x8xbf16> to vector<1x1x8x8xbf16>
      tpu.vector_store %arg19[%73, %c1_50, %c0_51, %c0_52], %76 {strides = array<i32>} : memref<2x4x8x8xbf16, #tpu.memory_space<vmem>>, vector<1x1x8x8xbf16>,
      %c2 = arith.constant 2 : index
      %c0_53 = arith.constant 0 : index
      %c0_54 = arith.constant 0 : index
      %77 = vector.load %arg9[%c2, %c0_53, %c0_54] : memref<4x8x8xbf16, #tpu.memory_space<vmem>>, vector<1x8x8xbf16>
      %78 = vector.shape_cast %77 : vector<1x8x8xbf16> to vector<8x8xbf16>
      %cst_55 = arith.constant dense<0.000000e+00> : vector<8x8xf32>
      %79 = tpu.matmul %28, %78, %cst_55 {dimension_numbers = #tpu.dot_dimension_numbers<[1], [0], [0], [1], [0, 0, 1, 1], [], []>} : vector<8x8xbf16>, vector<8x8xbf16>, vector<8x8xf32> -> vector<8x8xf32>
      %c2_56 = arith.constant 2 : index
      %c0_57 = arith.constant 0 : index
      %c0_58 = arith.constant 0 : index
      %80 = vector.load %arg10[%c2_56, %c0_57, %c0_58] : memref<4x1x8xf32, #tpu.memory_space<vmem>>, vector<1x1x8xf32>
      %81 = vector.shape_cast %80 : vector<1x1x8xf32> to vector<1x8xf32>
      %82 = vector.broadcast %81 : vector<1x8xf32> to vector<8x8xf32>
      %83 = arith.addf %79, %82 : vector<8x8xf32>
      %c2_59 = arith.constant 2 : index
      %c0_60 = arith.constant 0 : index
      %c0_61 = arith.constant 0 : index
      %84 = vector.load %arg11[%c2_59, %c0_60, %c0_61] : memref<4x8x8xbf16, #tpu.memory_space<vmem>>, vector<1x8x8xbf16>
      %85 = vector.shape_cast %84 : vector<1x8x8xbf16> to vector<8x8xbf16>
      %cst_62 = arith.constant dense<0.000000e+00> : vector<8x8xf32>
      %86 = tpu.matmul %28, %85, %cst_62 {dimension_numbers = #tpu.dot_dimension_numbers<[1], [0], [0], [1], [0, 0, 1, 1], [], []>} : vector<8x8xbf16>, vector<8x8xbf16>, vector<8x8xf32> -> vector<8x8xf32>
      %c2_63 = arith.constant 2 : index
      %c0_64 = arith.constant 0 : index
      %c0_65 = arith.constant 0 : index
      %87 = vector.load %arg12[%c2_63, %c0_64, %c0_65] : memref<4x1x8xf32, #tpu.memory_space<vmem>>, vector<1x1x8xf32>
      %88 = vector.shape_cast %87 : vector<1x1x8xf32> to vector<1x8xf32>
      %89 = vector.broadcast %88 : vector<1x8xf32> to vector<8x8xf32>
      %90 = arith.addf %86, %89 : vector<8x8xf32>
      %91 = arith.truncf %83 : vector<8x8xf32> to vector<8x8xbf16>
      %92 = arith.index_cast %3 : i32 to index
      %c2_66 = arith.constant 2 : index
      %c0_67 = arith.constant 0 : index
      %c0_68 = arith.constant 0 : index
      %93 = vector.load %arg18[%92, %c2_66, %c0_67, %c0_68] : memref<2x4x8x8xbf16, #tpu.memory_space<vmem>>, vector<1x1x8x8xbf16>
      %94 = vector.shape_cast %93 : vector<1x1x8x8xbf16> to vector<8x8xbf16>
      %95 = vector.shape_cast %91 : vector<8x8xbf16> to vector<1x1x8x8xbf16>
      tpu.vector_store %arg18[%92, %c2_66, %c0_67, %c0_68], %95 {strides = array<i32>} : memref<2x4x8x8xbf16, #tpu.memory_space<vmem>>, vector<1x1x8x8xbf16>,
      %96 = arith.truncf %90 : vector<8x8xf32> to vector<8x8xbf16>
      %97 = arith.index_cast %3 : i32 to index
      %c2_69 = arith.constant 2 : index
      %c0_70 = arith.constant 0 : index
      %c0_71 = arith.constant 0 : index
      %98 = vector.load %arg19[%97, %c2_69, %c0_70, %c0_71] : memref<2x4x8x8xbf16, #tpu.memory_space<vmem>>, vector<1x1x8x8xbf16>
      %99 = vector.shape_cast %98 : vector<1x1x8x8xbf16> to vector<8x8xbf16>
      %100 = vector.shape_cast %96 : vector<8x8xbf16> to vector<1x1x8x8xbf16>
      tpu.vector_store %arg19[%97, %c2_69, %c0_70, %c0_71], %100 {strides = array<i32>} : memref<2x4x8x8xbf16, #tpu.memory_space<vmem>>, vector<1x1x8x8xbf16>,
      %c3 = arith.constant 3 : index
      %c0_72 = arith.constant 0 : index
      %c0_73 = arith.constant 0 : index
      %101 = vector.load %arg9[%c3, %c0_72, %c0_73] : memref<4x8x8xbf16, #tpu.memory_space<vmem>>, vector<1x8x8xbf16>
      %102 = vector.shape_cast %101 : vector<1x8x8xbf16> to vector<8x8xbf16>
      %cst_74 = arith.constant dense<0.000000e+00> : vector<8x8xf32>
      %103 = tpu.matmul %28, %102, %cst_74 {dimension_numbers = #tpu.dot_dimension_numbers<[1], [0], [0], [1], [0, 0, 1, 1], [], []>} : vector<8x8xbf16>, vector<8x8xbf16>, vector<8x8xf32> -> vector<8x8xf32>
      %c3_75 = arith.constant 3 : index
      %c0_76 = arith.constant 0 : index
      %c0_77 = arith.constant 0 : index
      %104 = vector.load %arg10[%c3_75, %c0_76, %c0_77] : memref<4x1x8xf32, #tpu.memory_space<vmem>>, vector<1x1x8xf32>
      %105 = vector.shape_cast %104 : vector<1x1x8xf32> to vector<1x8xf32>
      %106 = vector.broadcast %105 : vector<1x8xf32> to vector<8x8xf32>
      %107 = arith.addf %103, %106 : vector<8x8xf32>
      %c3_78 = arith.constant 3 : index
      %c0_79 = arith.constant 0 : index
      %c0_80 = arith.constant 0 : index
      %108 = vector.load %arg11[%c3_78, %c0_79, %c0_80] : memref<4x8x8xbf16, #tpu.memory_space<vmem>>, vector<1x8x8xbf16>
      %109 = vector.shape_cast %108 : vector<1x8x8xbf16> to vector<8x8xbf16>
      %cst_81 = arith.constant dense<0.000000e+00> : vector<8x8xf32>
      %110 = tpu.matmul %28, %109, %cst_81 {dimension_numbers = #tpu.dot_dimension_numbers<[1], [0], [0], [1], [0, 0, 1, 1], [], []>} : vector<8x8xbf16>, vector<8x8xbf16>, vector<8x8xf32> -> vector<8x8xf32>
      %c3_82 = arith.constant 3 : index
      %c0_83 = arith.constant 0 : index
      %c0_84 = arith.constant 0 : index
      %111 = vector.load %arg12[%c3_82, %c0_83, %c0_84] : memref<4x1x8xf32, #tpu.memory_space<vmem>>, vector<1x1x8xf32>
      %112 = vector.shape_cast %111 : vector<1x1x8xf32> to vector<1x8xf32>
      %113 = vector.broadcast %112 : vector<1x8xf32> to vector<8x8xf32>
      %114 = arith.addf %110, %113 : vector<8x8xf32>
      %115 = arith.truncf %107 : vector<8x8xf32> to vector<8x8xbf16>
      %116 = arith.index_cast %3 : i32 to index
      %c3_85 = arith.constant 3 : index
      %c0_86 = arith.constant 0 : index
      %c0_87 = arith.constant 0 : index
      %117 = vector.load %arg18[%116, %c3_85, %c0_86, %c0_87] : memref<2x4x8x8xbf16, #tpu.memory_space<vmem>>, vector<1x1x8x8xbf16>
      %118 = vector.shape_cast %117 : vector<1x1x8x8xbf16> to vector<8x8xbf16>
      %119 = vector.shape_cast %115 : vector<8x8xbf16> to vector<1x1x8x8xbf16>
      tpu.vector_store %arg18[%116, %c3_85, %c0_86, %c0_87], %119 {strides = array<i32>} : memref<2x4x8x8xbf16, #tpu.memory_space<vmem>>, vector<1x1x8x8xbf16>,
      %120 = arith.truncf %114 : vector<8x8xf32> to vector<8x8xbf16>
      %121 = arith.index_cast %3 : i32 to index
      %c3_88 = arith.constant 3 : index
      %c0_89 = arith.constant 0 : index
      %c0_90 = arith.constant 0 : index
      %122 = vector.load %arg19[%121, %c3_88, %c0_89, %c0_90] : memref<2x4x8x8xbf16, #tpu.memory_space<vmem>>, vector<1x1x8x8xbf16>
      %123 = vector.shape_cast %122 : vector<1x1x8x8xbf16> to vector<8x8xbf16>
      %124 = vector.shape_cast %120 : vector<8x8xbf16> to vector<1x1x8x8xbf16>
      tpu.vector_store %arg19[%121, %c3_88, %c0_89, %c0_90], %124 {strides = array<i32>} : memref<2x4x8x8xbf16, #tpu.memory_space<vmem>>, vector<1x1x8x8xbf16>,
    } else {
    }
    %10 = arith.extui %5 : i1 to i32
    %c0_i32_2 = arith.constant 0 : i32
    %11 = arith.cmpi ne, %10, %c0_i32_2 : i32
    scf.if %11 {
      %17 = arith.index_cast %3 : i32 to index
      %c0 = arith.constant 0 : index
      %c0_5 = arith.constant 0 : index
      %c0_6 = arith.constant 0 : index
      %18 = vector.load %arg18[%17, %c0, %c0_5, %c0_6] : memref<2x4x8x8xbf16, #tpu.memory_space<vmem>>, vector<1x4x8x8xbf16>
      %19 = vector.shape_cast %18 : vector<1x4x8x8xbf16> to vector<4x8x8xbf16>
      %20 = arith.index_cast %3 : i32 to index
      %c0_7 = arith.constant 0 : index
      %c0_8 = arith.constant 0 : index
      %c0_9 = arith.constant 0 : index
      %21 = vector.load %arg19[%20, %c0_7, %c0_8, %c0_9] : memref<2x4x8x8xbf16, #tpu.memory_space<vmem>>, vector<1x4x8x8xbf16>
      %22 = vector.shape_cast %21 : vector<1x4x8x8xbf16> to vector<4x8x8xbf16>
      %c0_10 = arith.constant 0 : index
      %c0_11 = arith.constant 0 : index
      %c0_12 = arith.constant 0 : index
      %23 = vector.load %arg17[%c0_10, %c0_11, %c0_12] : memref<4x8x8xbf16, #tpu.memory_space<vmem>>, vector<4x8x8xbf16>
      "tpu.trace_start"() <{level = 10 : i32, message = "hqd,hkd->hqk"}> : () -> ()
      %cst = arith.constant dense<0.000000e+00> : vector<4x8x8xf32>
      %24 = tpu.matmul %23, %19, %cst {dimension_numbers = #tpu.dot_dimension_numbers<[2], [2], [1], [1], [0, 0, 0, 1, 1, 1], [0], [0]>} : vector<4x8x8xbf16>, vector<4x8x8xbf16>, vector<4x8x8xf32> -> vector<4x8x8xf32>
      "tpu.trace_stop"() : () -> ()
      %25 = tpu.iota {dimensions = array<i32: 0>} : vector<8x8xi32>
      %26 = tpu.iota {dimensions = array<i32: 1>} : vector<8x8xi32>
      %27 = arith.cmpi sle, %26, %25 : vector<8x8xi32>
      %28 = vector.shape_cast %27 : vector<8x8xi1> to vector<1x8x8xi1>
      %cst_13 = arith.constant -1.000000e+30 : f32
      %29 = vector.shape_cast %28 : vector<1x8x8xi1> to vector<1x8x8xi1>
      %30 = vector.broadcast %29 : vector<1x8x8xi1> to vector<4x8x8xi1>
      %31 = vector.broadcast %cst_13 : f32 to vector<4x8x8xf32>
      %32 = arith.select %30, %24, %31 : vector<4x8x8xi1>, vector<4x8x8xf32>
      %c0_14 = arith.constant 0 : index
      %c0_15 = arith.constant 0 : index
      %c0_16 = arith.constant 0 : index
      %33 = vector.load %arg20[%c0_14, %c0_15, %c0_16] : memref<4x8x1xf32, #tpu.memory_space<vmem>>, vector<4x8x1xf32>
      %cst_17 = arith.constant dense<0xFF800000> : vector<4x8xf32>
      %34 = vector.multi_reduction <maximumf>, %32, %cst_17 [2] : vector<4x8x8xf32> to vector<4x8xf32>
      %35 = vector.shape_cast %34 : vector<4x8xf32> to vector<4x8x1xf32>
      %36 = arith.maximumf %33, %35 : vector<4x8x1xf32>
      %37 = arith.subf %33, %36 : vector<4x8x1xf32>
      %38 = math.exp %37 : vector<4x8x1xf32>
      %39 = vector.broadcast %36 : vector<4x8x1xf32> to vector<4x8x8xf32>
      %40 = arith.subf %32, %39 : vector<4x8x8xf32>
      %41 = math.exp %40 : vector<4x8x8xf32>
      %c0_18 = arith.constant 0 : index
      %c0_19 = arith.constant 0 : index
      %c0_20 = arith.constant 0 : index
      %42 = vector.load %arg21[%c0_18, %c0_19, %c0_20] : memref<4x8x1xf32, #tpu.memory_space<vmem>>, vector<4x8x1xf32>
      %43 = arith.mulf %38, %42 : vector<4x8x1xf32>
      %cst_21 = arith.constant dense<0.000000e+00> : vector<4x8xf32>
      %44 = vector.multi_reduction <add>, %41, %cst_21 [2] : vector<4x8x8xf32> to vector<4x8xf32>
      %45 = vector.shape_cast %44 : vector<4x8xf32> to vector<4x8x1xf32>
      %46 = arith.addf %43, %45 : vector<4x8x1xf32>
      %c0_22 = arith.constant 0 : index
      %c0_23 = arith.constant 0 : index
      %c0_24 = arith.constant 0 : index
      %47 = vector.load %arg21[%c0_22, %c0_23, %c0_24] : memref<4x8x1xf32, #tpu.memory_space<vmem>>, vector<4x8x1xf32>
      tpu.vector_store %arg21[%c0_22, %c0_23, %c0_24], %46 {strides = array<i32>} : memref<4x8x1xf32, #tpu.memory_space<vmem>>, vector<4x8x1xf32>,
      %c0_25 = arith.constant 0 : index
      %c0_26 = arith.constant 0 : index
      %c0_27 = arith.constant 0 : index
      %48 = vector.load %arg22[%c0_25, %c0_26, %c0_27] : memref<4x8x8xf32, #tpu.memory_space<vmem>>, vector<4x8x8xf32>
      %49 = vector.broadcast %38 : vector<4x8x1xf32> to vector<4x8x8xf32>
      %50 = arith.mulf %49, %48 : vector<4x8x8xf32>
      %51 = arith.truncf %41 : vector<4x8x8xf32> to vector<4x8x8xbf16>
      "tpu.trace_start"() <{level = 10 : i32, message = "hqk,hkd->hqd"}> : () -> ()
      %cst_28 = arith.constant dense<0.000000e+00> : vector<4x8x8xf32>
      %52 = tpu.matmul %51, %22, %cst_28 {dimension_numbers = #tpu.dot_dimension_numbers<[2], [1], [1], [2], [0, 0, 0, 1, 1, 2], [0], [0]>} : vector<4x8x8xbf16>, vector<4x8x8xbf16>, vector<4x8x8xf32> -> vector<4x8x8xf32>
      "tpu.trace_stop"() : () -> ()
      %53 = arith.addf %50, %52 : vector<4x8x8xf32>
      %c0_29 = arith.constant 0 : index
      %c0_30 = arith.constant 0 : index
      %c0_31 = arith.constant 0 : index
      %54 = vector.load %arg22[%c0_29, %c0_30, %c0_31] : memref<4x8x8xf32, #tpu.memory_space<vmem>>, vector<4x8x8xf32>
      tpu.vector_store %arg22[%c0_29, %c0_30, %c0_31], %53 {strides = array<i32>} : memref<4x8x8xf32, #tpu.memory_space<vmem>>, vector<4x8x8xf32>,
      %c0_32 = arith.constant 0 : index
      %c0_33 = arith.constant 0 : index
      %c0_34 = arith.constant 0 : index
      %55 = vector.load %arg20[%c0_32, %c0_33, %c0_34] : memref<4x8x1xf32, #tpu.memory_space<vmem>>, vector<4x8x1xf32>
      tpu.vector_store %arg20[%c0_32, %c0_33, %c0_34], %36 {strides = array<i32>} : memref<4x8x1xf32, #tpu.memory_space<vmem>>, vector<4x8x1xf32>,
    } else {
    }
    %true = arith.constant true
    %12 = arith.xori %5, %true : i1
    %13 = arith.extui %12 : i1 to i32
    %c0_i32_3 = arith.constant 0 : i32
    %14 = arith.cmpi ne, %13, %c0_i32_3 : i32
    scf.if %14 {
      %17 = arith.index_cast %3 : i32 to index
      %c0 = arith.constant 0 : index
      %c0_5 = arith.constant 0 : index
      %c0_6 = arith.constant 0 : index
      %18 = vector.load %arg18[%17, %c0, %c0_5, %c0_6] : memref<2x4x8x8xbf16, #tpu.memory_space<vmem>>, vector<1x4x8x8xbf16>
      %19 = vector.shape_cast %18 : vector<1x4x8x8xbf16> to vector<4x8x8xbf16>
      %20 = arith.index_cast %3 : i32 to index
      %c0_7 = arith.constant 0 : index
      %c0_8 = arith.constant 0 : index
      %c0_9 = arith.constant 0 : index
      %21 = vector.load %arg19[%20, %c0_7, %c0_8, %c0_9] : memref<2x4x8x8xbf16, #tpu.memory_space<vmem>>, vector<1x4x8x8xbf16>
      %22 = vector.shape_cast %21 : vector<1x4x8x8xbf16> to vector<4x8x8xbf16>
      %c0_10 = arith.constant 0 : index
      %c0_11 = arith.constant 0 : index
      %c0_12 = arith.constant 0 : index
      %23 = vector.load %arg17[%c0_10, %c0_11, %c0_12] : memref<4x8x8xbf16, #tpu.memory_space<vmem>>, vector<4x8x8xbf16>
      "tpu.trace_start"() <{level = 10 : i32, message = "hqd,hkd->hqk"}> : () -> ()
      %cst = arith.constant dense<0.000000e+00> : vector<4x8x8xf32>
      %24 = tpu.matmul %23, %19, %cst {dimension_numbers = #tpu.dot_dimension_numbers<[2], [2], [1], [1], [0, 0, 0, 1, 1, 1], [0], [0]>} : vector<4x8x8xbf16>, vector<4x8x8xbf16>, vector<4x8x8xf32> -> vector<4x8x8xf32>
      "tpu.trace_stop"() : () -> ()
      %c0_13 = arith.constant 0 : index
      %c0_14 = arith.constant 0 : index
      %c0_15 = arith.constant 0 : index
      %25 = vector.load %arg20[%c0_13, %c0_14, %c0_15] : memref<4x8x1xf32, #tpu.memory_space<vmem>>, vector<4x8x1xf32>
      %cst_16 = arith.constant dense<0xFF800000> : vector<4x8xf32>
      %26 = vector.multi_reduction <maximumf>, %24, %cst_16 [2] : vector<4x8x8xf32> to vector<4x8xf32>
      %27 = vector.shape_cast %26 : vector<4x8xf32> to vector<4x8x1xf32>
      %28 = arith.maximumf %25, %27 : vector<4x8x1xf32>
      %29 = arith.subf %25, %28 : vector<4x8x1xf32>
      %30 = math.exp %29 : vector<4x8x1xf32>
      %31 = vector.broadcast %28 : vector<4x8x1xf32> to vector<4x8x8xf32>
      %32 = arith.subf %24, %31 : vector<4x8x8xf32>
      %33 = math.exp %32 : vector<4x8x8xf32>
      %c0_17 = arith.constant 0 : index
      %c0_18 = arith.constant 0 : index
      %c0_19 = arith.constant 0 : index
      %34 = vector.load %arg21[%c0_17, %c0_18, %c0_19] : memref<4x8x1xf32, #tpu.memory_space<vmem>>, vector<4x8x1xf32>
      %35 = arith.mulf %30, %34 : vector<4x8x1xf32>
      %cst_20 = arith.constant dense<0.000000e+00> : vector<4x8xf32>
      %36 = vector.multi_reduction <add>, %33, %cst_20 [2] : vector<4x8x8xf32> to vector<4x8xf32>
      %37 = vector.shape_cast %36 : vector<4x8xf32> to vector<4x8x1xf32>
      %38 = arith.addf %35, %37 : vector<4x8x1xf32>
      %c0_21 = arith.constant 0 : index
      %c0_22 = arith.constant 0 : index
      %c0_23 = arith.constant 0 : index
      %39 = vector.load %arg21[%c0_21, %c0_22, %c0_23] : memref<4x8x1xf32, #tpu.memory_space<vmem>>, vector<4x8x1xf32>
      tpu.vector_store %arg21[%c0_21, %c0_22, %c0_23], %38 {strides = array<i32>} : memref<4x8x1xf32, #tpu.memory_space<vmem>>, vector<4x8x1xf32>,
      %c0_24 = arith.constant 0 : index
      %c0_25 = arith.constant 0 : index
      %c0_26 = arith.constant 0 : index
      %40 = vector.load %arg22[%c0_24, %c0_25, %c0_26] : memref<4x8x8xf32, #tpu.memory_space<vmem>>, vector<4x8x8xf32>
      %41 = vector.broadcast %30 : vector<4x8x1xf32> to vector<4x8x8xf32>
      %42 = arith.mulf %41, %40 : vector<4x8x8xf32>
      %43 = arith.truncf %33 : vector<4x8x8xf32> to vector<4x8x8xbf16>
      "tpu.trace_start"() <{level = 10 : i32, message = "hqk,hkd->hqd"}> : () -> ()
      %cst_27 = arith.constant dense<0.000000e+00> : vector<4x8x8xf32>
      %44 = tpu.matmul %43, %22, %cst_27 {dimension_numbers = #tpu.dot_dimension_numbers<[2], [1], [1], [2], [0, 0, 0, 1, 1, 2], [0], [0]>} : vector<4x8x8xbf16>, vector<4x8x8xbf16>, vector<4x8x8xf32> -> vector<4x8x8xf32>
      "tpu.trace_stop"() : () -> ()
      %45 = arith.addf %42, %44 : vector<4x8x8xf32>
      %c0_28 = arith.constant 0 : index
      %c0_29 = arith.constant 0 : index
      %c0_30 = arith.constant 0 : index
      %46 = vector.load %arg22[%c0_28, %c0_29, %c0_30] : memref<4x8x8xf32, #tpu.memory_space<vmem>>, vector<4x8x8xf32>
      tpu.vector_store %arg22[%c0_28, %c0_29, %c0_30], %45 {strides = array<i32>} : memref<4x8x8xf32, #tpu.memory_space<vmem>>, vector<4x8x8xf32>,
      %c0_31 = arith.constant 0 : index
      %c0_32 = arith.constant 0 : index
      %c0_33 = arith.constant 0 : index
      %47 = vector.load %arg20[%c0_31, %c0_32, %c0_33] : memref<4x8x1xf32, #tpu.memory_space<vmem>>, vector<4x8x1xf32>
      tpu.vector_store %arg20[%c0_31, %c0_32, %c0_33], %28 {strides = array<i32>} : memref<4x8x1xf32, #tpu.memory_space<vmem>>, vector<4x8x1xf32>,
    } else {
    }
    %15 = arith.extui %5 : i1 to i32
    %c0_i32_4 = arith.constant 0 : i32
    %16 = arith.cmpi ne, %15, %c0_i32_4 : i32
    scf.if %16 {
      %c0 = arith.constant 0 : index
      %c0_5 = arith.constant 0 : index
      %c0_6 = arith.constant 0 : index
      %17 = vector.load %arg22[%c0, %c0_5, %c0_6] : memref<4x8x8xf32, #tpu.memory_space<vmem>>, vector<4x8x8xf32>
      %c0_7 = arith.constant 0 : index
      %c0_8 = arith.constant 0 : index
      %c0_9 = arith.constant 0 : index
      %18 = vector.load %arg21[%c0_7, %c0_8, %c0_9] : memref<4x8x1xf32, #tpu.memory_space<vmem>>, vector<4x8x1xf32>
      %19 = vector.broadcast %18 : vector<4x8x1xf32> to vector<4x8x8xf32>
      %20 = arith.divf %17, %19 : vector<4x8x8xf32>
      %21 = arith.truncf %20 : vector<4x8x8xf32> to vector<4x8x8xbf16>
      %cst = arith.constant 0.000000e+00 : f32
      %22 = vector.broadcast %cst : f32 to vector<8x32xf32>
      %23 = vector.extract_strided_slice %21 {offsets = [0, 0, 0], sizes = [1, 8, 8], strides = [1, 1, 1]} : vector<4x8x8xbf16> to vector<1x8x8xbf16>
      %24 = vector.shape_cast %23 : vector<1x8x8xbf16> to vector<8x8xbf16>
      %c0_10 = arith.constant 0 : index
      %c0_11 = arith.constant 0 : index
      %c0_12 = arith.constant 0 : index
      %25 = vector.load %arg13[%c0_10, %c0_11, %c0_12] : memref<4x8x32xbf16, #tpu.memory_space<vmem>>, vector<1x8x32xbf16>
      %26 = vector.shape_cast %25 : vector<1x8x32xbf16> to vector<8x32xbf16>
      %cst_13 = arith.constant dense<0.000000e+00> : vector<8x32xf32>
      %27 = tpu.matmul %24, %26, %cst_13 {dimension_numbers = #tpu.dot_dimension_numbers<[1], [0], [0], [1], [0, 0, 1, 1], [], []>} : vector<8x8xbf16>, vector<8x32xbf16>, vector<8x32xf32> -> vector<8x32xf32>
      %28 = arith.addf %22, %27 : vector<8x32xf32>
      %29 = vector.extract_strided_slice %21 {offsets = [1, 0, 0], sizes = [1, 8, 8], strides = [1, 1, 1]} : vector<4x8x8xbf16> to vector<1x8x8xbf16>
      %30 = vector.shape_cast %29 : vector<1x8x8xbf16> to vector<8x8xbf16>
      %c1 = arith.constant 1 : index
      %c0_14 = arith.constant 0 : index
      %c0_15 = arith.constant 0 : index
      %31 = vector.load %arg13[%c1, %c0_14, %c0_15] : memref<4x8x32xbf16, #tpu.memory_space<vmem>>, vector<1x8x32xbf16>
      %32 = vector.shape_cast %31 : vector<1x8x32xbf16> to vector<8x32xbf16>
      %cst_16 = arith.constant dense<0.000000e+00> : vector<8x32xf32>
      %33 = tpu.matmul %30, %32, %cst_16 {dimension_numbers = #tpu.dot_dimension_numbers<[1], [0], [0], [1], [0, 0, 1, 1], [], []>} : vector<8x8xbf16>, vector<8x32xbf16>, vector<8x32xf32> -> vector<8x32xf32>
      %34 = arith.addf %28, %33 : vector<8x32xf32>
      %35 = vector.extract_strided_slice %21 {offsets = [2, 0, 0], sizes = [1, 8, 8], strides = [1, 1, 1]} : vector<4x8x8xbf16> to vector<1x8x8xbf16>
      %36 = vector.shape_cast %35 : vector<1x8x8xbf16> to vector<8x8xbf16>
      %c2 = arith.constant 2 : index
      %c0_17 = arith.constant 0 : index
      %c0_18 = arith.constant 0 : index
      %37 = vector.load %arg13[%c2, %c0_17, %c0_18] : memref<4x8x32xbf16, #tpu.memory_space<vmem>>, vector<1x8x32xbf16>
      %38 = vector.shape_cast %37 : vector<1x8x32xbf16> to vector<8x32xbf16>
      %cst_19 = arith.constant dense<0.000000e+00> : vector<8x32xf32>
      %39 = tpu.matmul %36, %38, %cst_19 {dimension_numbers = #tpu.dot_dimension_numbers<[1], [0], [0], [1], [0, 0, 1, 1], [], []>} : vector<8x8xbf16>, vector<8x32xbf16>, vector<8x32xf32> -> vector<8x32xf32>
      %40 = arith.addf %34, %39 : vector<8x32xf32>
      %41 = vector.extract_strided_slice %21 {offsets = [3, 0, 0], sizes = [1, 8, 8], strides = [1, 1, 1]} : vector<4x8x8xbf16> to vector<1x8x8xbf16>
      %42 = vector.shape_cast %41 : vector<1x8x8xbf16> to vector<8x8xbf16>
      %c3 = arith.constant 3 : index
      %c0_20 = arith.constant 0 : index
      %c0_21 = arith.constant 0 : index
      %43 = vector.load %arg13[%c3, %c0_20, %c0_21] : memref<4x8x32xbf16, #tpu.memory_space<vmem>>, vector<1x8x32xbf16>
      %44 = vector.shape_cast %43 : vector<1x8x32xbf16> to vector<8x32xbf16>
      %cst_22 = arith.constant dense<0.000000e+00> : vector<8x32xf32>
      %45 = tpu.matmul %42, %44, %cst_22 {dimension_numbers = #tpu.dot_dimension_numbers<[1], [0], [0], [1], [0, 0, 1, 1], [], []>} : vector<8x8xbf16>, vector<8x32xbf16>, vector<8x32xf32> -> vector<8x32xf32>
      %46 = arith.addf %40, %45 : vector<8x32xf32>
      %c0_23 = arith.constant 0 : index
      %c0_24 = arith.constant 0 : index
      %47 = vector.load %arg14[%c0_23, %c0_24] : memref<1x32xf32, #tpu.memory_space<vmem>>, vector<1x32xf32>
      %48 = vector.broadcast %47 : vector<1x32xf32> to vector<8x32xf32>
      %49 = arith.addf %46, %48 : vector<8x32xf32>
      %c0_25 = arith.constant 0 : index
      %c0_26 = arith.constant 0 : index
      %c0_27 = arith.constant 0 : index
      %50 = vector.load %arg15[%c0_25, %c0_26, %c0_27] : memref<1x8x32xf32, #tpu.memory_space<vmem>>, vector<1x8x32xf32>
      %51 = vector.shape_cast %50 : vector<1x8x32xf32> to vector<8x32xf32>
      %52 = vector.shape_cast %49 : vector<8x32xf32> to vector<1x8x32xf32>
      tpu.vector_store %arg15[%c0_25, %c0_26, %c0_27], %52 {strides = array<i32>} : memref<1x8x32xf32, #tpu.memory_space<vmem>>, vector<1x8x32xf32>,
    } else {
    }
    return
  }
  func.func @transform_0(%arg0: i32, %arg1: i32, %arg2: memref<3xi32, #tpu.memory_space<smem>>, %arg3: memref<3xi32, #tpu.memory_space<smem>>) -> (i32, i32, i32) {
    %0 = arith.index_cast %arg1 : i32 to index
    %1 = memref.load %arg2[%0] : memref<3xi32, #tpu.memory_space<smem>>
    %c0_i32 = arith.constant 0 : i32
    %c0_i32_0 = arith.constant 0 : i32
    return %arg0, %1, %c0_i32 : i32, i32, i32
  }
  func.func @transform_1(%arg0: i32, %arg1: i32, %arg2: memref<3xi32, #tpu.memory_space<smem>>, %arg3: memref<3xi32, #tpu.memory_space<smem>>) -> (i32, i32, i32) {
    %c0_i32 = arith.constant 0 : i32
    %c0_i32_0 = arith.constant 0 : i32
    %c0_i32_1 = arith.constant 0 : i32
    %c0_i32_2 = arith.constant 0 : i32
    return %c0_i32, %c0_i32_0, %c0_i32_1 : i32, i32, i32
  }
  func.func @transform_2(%arg0: i32, %arg1: i32, %arg2: memref<3xi32, #tpu.memory_space<smem>>, %arg3: memref<3xi32, #tpu.memory_space<smem>>) -> (i32, i32, i32) {
    %c0_i32 = arith.constant 0 : i32
    %c0_i32_0 = arith.constant 0 : i32
    %c0_i32_1 = arith.constant 0 : i32
    %c0_i32_2 = arith.constant 0 : i32
    return %c0_i32, %c0_i32_0, %c0_i32_1 : i32, i32, i32
  }
  func.func @transform_3(%arg0: i32, %arg1: i32, %arg2: memref<3xi32, #tpu.memory_space<smem>>, %arg3: memref<3xi32, #tpu.memory_space<smem>>) -> (i32, i32) {
    %c0_i32 = arith.constant 0 : i32
    %c0_i32_0 = arith.constant 0 : i32
    %c0_i32_1 = arith.constant 0 : i32
    return %c0_i32, %c0_i32_0 : i32, i32
  }
  func.func @transform_4(%arg0: i32, %arg1: i32, %arg2: memref<3xi32, #tpu.memory_space<smem>>, %arg3: memref<3xi32, #tpu.memory_space<smem>>) -> (i32, i32) {
    %c0_i32 = arith.constant 0 : i32
    %c0_i32_0 = arith.constant 0 : i32
    %c0_i32_1 = arith.constant 0 : i32
    return %c0_i32, %c0_i32_0 : i32, i32
  }
  func.func @transform_5(%arg0: i32, %arg1: i32, %arg2: memref<3xi32, #tpu.memory_space<smem>>, %arg3: memref<3xi32, #tpu.memory_space<smem>>) -> (i32, i32, i32) {
    %c0_i32 = arith.constant 0 : i32
    %c0_i32_0 = arith.constant 0 : i32
    %c0_i32_1 = arith.constant 0 : i32
    %c0_i32_2 = arith.constant 0 : i32
    return %c0_i32, %c0_i32_0, %c0_i32_1 : i32, i32, i32
  }
  func.func @transform_6(%arg0: i32, %arg1: i32, %arg2: memref<3xi32, #tpu.memory_space<smem>>, %arg3: memref<3xi32, #tpu.memory_space<smem>>) -> (i32, i32, i32) {
    %c0_i32 = arith.constant 0 : i32
    %c0_i32_0 = arith.constant 0 : i32
    %c0_i32_1 = arith.constant 0 : i32
    %c0_i32_2 = arith.constant 0 : i32
    return %c0_i32, %c0_i32_0, %c0_i32_1 : i32, i32, i32
  }
  func.func @transform_7(%arg0: i32, %arg1: i32, %arg2: memref<3xi32, #tpu.memory_space<smem>>, %arg3: memref<3xi32, #tpu.memory_space<smem>>) -> (i32, i32, i32) {
    %c0_i32 = arith.constant 0 : i32
    %c0_i32_0 = arith.constant 0 : i32
    %c0_i32_1 = arith.constant 0 : i32
    %c0_i32_2 = arith.constant 0 : i32
    return %c0_i32, %c0_i32_0, %c0_i32_1 : i32, i32, i32
  }
  func.func @transform_8(%arg0: i32, %arg1: i32, %arg2: memref<3xi32, #tpu.memory_space<smem>>, %arg3: memref<3xi32, #tpu.memory_space<smem>>) -> (i32, i32, i32) {
    %c0_i32 = arith.constant 0 : i32
    %c0_i32_0 = arith.constant 0 : i32
    %c0_i32_1 = arith.constant 0 : i32
    %c0_i32_2 = arith.constant 0 : i32
    return %c0_i32, %c0_i32_0, %c0_i32_1 : i32, i32, i32
  }
  func.func @transform_9(%arg0: i32, %arg1: i32, %arg2: memref<3xi32, #tpu.memory_space<smem>>, %arg3: memref<3xi32, #tpu.memory_space<smem>>) -> (i32, i32, i32) {
    %c0_i32 = arith.constant 0 : i32
    %c0_i32_0 = arith.constant 0 : i32
    %c0_i32_1 = arith.constant 0 : i32
    %c0_i32_2 = arith.constant 0 : i32
    return %c0_i32, %c0_i32_0, %c0_i32_1 : i32, i32, i32
  }
  func.func @transform_10(%arg0: i32, %arg1: i32, %arg2: memref<3xi32, #tpu.memory_space<smem>>, %arg3: memref<3xi32, #tpu.memory_space<smem>>) -> (i32, i32) {
    %c0_i32 = arith.constant 0 : i32
    %c0_i32_0 = arith.constant 0 : i32
    %c0_i32_1 = arith.constant 0 : i32
    return %c0_i32, %c0_i32_0 : i32, i32
  }
  func.func @transform_11(%arg0: i32, %arg1: i32, %arg2: memref<3xi32, #tpu.memory_space<smem>>, %arg3: memref<3xi32, #tpu.memory_space<smem>>) -> (i32, i32, i32) {
    %0 = arith.index_cast %arg1 : i32 to index
    %1 = memref.load %arg2[%0] : memref<3xi32, #tpu.memory_space<smem>>
    %c0_i32 = arith.constant 0 : i32
    %c0_i32_0 = arith.constant 0 : i32
    return %arg0, %1, %c0_i32 : i32, i32, i32
  }
  func.func @transform_12(%arg0: i32, %arg1: i32, %arg2: memref<3xi32, #tpu.memory_space<smem>>, %arg3: memref<3xi32, #tpu.memory_space<smem>>) -> (i32, i32, i32) {
    %0 = arith.index_cast %arg1 : i32 to index
    %1 = memref.load %arg2[%0] : memref<3xi32, #tpu.memory_space<smem>>
    %c0_i32 = arith.constant 0 : i32
    %c0_i32_0 = arith.constant 0 : i32
    return %arg0, %1, %c0_i32 : i32, i32, i32
  }
}

</mosaic_0001>

<bundles_post_ra>
// kernel: tpu_custom_call.1
= control target key start
LH: loop header
LB: loop body
LE: loop exit
PB: predicated region body
PF: predicated region fallthrough
CT: control target
= control target key end

     0   :  { %s3542_s29 = smov [#allocation9]   ;;  %s3543_s16 = smov [#allocation10]   ;;  %s4207_s0 = inlined_call_operand.hbm [shape: s32[3], index: 0, kind: input, shape index: {}]   ;;  %s4208_s2 = inlined_call_operand.vmem [shape: f32[2,16,32], index: 2, kind: input, shape index: {}]   ;;  %s4209_s3 = inlined_call_operand.vmem [shape: bf16[4,32,8], index: 3, kind: input, shape index: {}]   ;;  %s4210_s4 = inlined_call_operand.vmem [shape: f32[4,1,8], index: 4, kind: input, shape index: {}]   ;;  %s4211_s5 = inlined_call_operand.vmem [shape: bf16[32,8], index: 5, kind: input, shape index: {}]   ;;  %s4212_s6 = inlined_call_operand.hbm [shape: f32[1,8], index: 6, kind: input, shape index: {}]   ;;  %s4213_s7 = inlined_call_operand.vmem [shape: bf16[4,8,8], index: 7, kind: input, shape index: {}]   ;;  %s4214_s8 = inlined_call_operand.vmem [shape: f32[4,1,8], index: 8, kind: input, shape index: {}]   ;;  %s4215_s9 = inlined_call_operand.vmem [shape: bf16[4,8,8], index: 9, kind: input, shape index: {}]   ;;  %s4216_s10 = inlined_call_operand.vmem [shape: f32[4,1,8], index: 10, kind: input, shape index: {}]   ;;  %s4217_s11 = inlined_call_operand.vmem [shape: bf16[4,8,32], index: 11, kind: input, shape index: {}]   ;;  %s4218_s12 = inlined_call_operand.vmem [shape: f32[1,32], index: 12, kind: input, shape index: {}]   ;;  %s4219_s13 = inlined_call_operand.hbm [shape: f32[2,16,32], index: 13, kind: output, shape index: {0}]   ;;  %s4220_s14 = inlined_call_operand.vmem [shape: f32[2,16,8], index: 14, kind: output, shape index: {1}]   ;;  %s4221_s1 = inlined_call_operand.hbm [shape: s32[3], index: 1, kind: input, shape index: {}]  }
   0x1   :  { %4235 = sst [smem:[#allocation30_spill]] %s4208_s2 }
   0x2   :  { %4236 = sst [smem:[#allocation31_spill]] %s4209_s3 }
   0x3   :  { %4237 = sst [smem:[#allocation32_spill]] %s4212_s6 }
   0x4   :  { %4238 = sst [smem:[#allocation33_spill]] %s4219_s13 }
   0x5   :  { %21 = dma.hbm_to_smem %s4207_s0, 16, %s3542_s29, [#allocation8] }
   0x6   :  { %23 = dma.hbm_to_smem %s4221_s1, 16, %s3543_s16, [#allocation8] }
   0x7   :  { %3500 = dma.done.wait [#allocation8], 32 }
   0x8   :  { %3501 = vsyncadd [#allocation8], 4294967264 }
   0x9   :  { %25 = sfence }
   0xa   :  { %26 = vsyncpa [#allocation12], 0 }
   0xb   :  { %27 = vsyncpa [#allocation13], 0 }
   0xc   :  { %29 = vsyncpa [#allocation13 + $0x1], 0  ;;  %s3639_s19 = smov 0   ;;  %s3641_s20 = smov 0  }
   0xd   :  { %s3643_s21 = smov 0   ;;  %s3645_s22 = smov 0  }
   0xe   :  { %s3647_s0 = smov 0   ;;  %s3649_s23 = smov 0  }
   0xf   :  { %s3651_s24 = smov 0   ;;  %s3653_s1 = smov 0  }
  0x10 LB: > { %4239 = sst [smem:[#allocation19_spill]] %s3512_s19  ;;  %s2825_s25 = sadd.s32 4294967295, %s3540_s1   ;;  %s3540_s1 = sphi %s3653_s1, %s35_s1   ;;  %s3536_s24 = sphi %s3651_s24, %s4272_s24   ;;  %s3532_s23 = sphi %s3649_s23, %s4271_s23   ;;  %s3528_s0 = sphi %s3647_s0, %s4270_s0   ;;  %s3524_s22 = sphi %s3645_s22, %s4269_s22   ;;  %s3520_s21 = sphi %s3643_s21, %s4268_s21   ;;  %s3516_s20 = sphi %s3641_s20, %s4267_s20   ;;  %s3512_s19 = sphi %s3639_s19, %s4266_s19  }
  0x11   : > { %4240 = sst [smem:[#allocation20_spill]] %s3516_s20  ;;  %s2826_s26 = sadd.s32 4294967294, %s3540_s1  }
  0x12   : > { %4241 = sst [smem:[#allocation21_spill]] %s3520_s21  ;;  %s44_s27 = sadd.s32 1, %s3532_s23 }
  0x13   : > { %4242 = sst [smem:[#allocation22_spill]] %s3528_s0  ;;  %s47_s28 = sadd.s32 1, %s3536_s24 }
  0x14   : > { %4243 = sst [smem:[#allocation23_spill]] %s3532_s23  ;;  %p45_p0 = scmp.ge.s32.totalorder %s44_s27, 3 }
  0x15   : > { %4244 = sst [smem:[#allocation24_spill]] %s3536_s24  ;;  %s298_s30 = sadd.s32 1, %s3520_s21 }
  0x16   : > { %4245 = sst [smem:[#allocation25_spill]] %s3540_s1  ;;  %p308_p1 = scmp.ne.s32.totalorder %s3520_s21, %s3516_s20 }
  0x17   : > { %s291_s29 = sld [smem:[#allocation9 + %s3532_s23]]  ;;  %s4274_s27 = smov (%p45_p0, %s44_s27), 0 }
  0x18   : > { %4246 = sst [smem:[#allocation26_spill]] %s4274_s27  ;;  %s4276_s28 = smov (!%p45_p0, %s47_s28), %s3536_s24 }
  0x19   : > { %s292_s15 = sld [smem:[#allocation9 + %s4274_s27]]  ;;  %p309_p2 = scmp.eq.s32.totalorder %s2825_s25, 5 }
  0x1a   : > { %p49_p3 = scmp.ge.s32.totalorder %s4276_s28, 2  ;;  %p314_p4 = scmp.ne.s32.totalorder %s3516_s20, %s3512_s19 }
  0x1b   : > { %p3693_p5 = por %p309_p2, %p308_p1  ;;  %p315_p6 = scmp.eq.s32.totalorder %s2826_s26, 5 }
  0x1c   : > { %s4278_s28 = smov (%p49_p3, %s4276_s28), 0  ;;  %p2827_p8 = scmp.ge.s32.totalorder %s3540_s1, 1 }
  0x1d   : > { %4248 = sst [smem:[#allocation27_spill]] %s4278_s28  ;;  %p3699_p7 = por %p315_p6, %p314_p4 }
  0x1e   : > { %s293_s18 = ssub.s32 %s3536_s24, %s4278_s28  ;;  %p352_p9 = scmp.lt.s32.totalorder %s3540_s1, 7 }
  0x1f   : > { %s4249_s17 = scalar_select %p3699_p7, 1, 0 }
  0x20   : > { %s294_s27 = ssub.s32 %s291_s29, %s292_s15  ;;  %p3707_p10 = pnand %p2827_p8, %p352_p9 }
  0x21   : > { %4250 = sst [smem:[#allocation28_spill]] %s4249_s17  ;;  %s295_s23 = sor.u32 %s294_s27, %s293_s18 }
  0x22   : > { %p296_p11 = scmp.eq.s32.totalorder %s295_s23, 0  ;;  %p3711_p12 = scmp.eq.s32.totalorder %s2825_s25, 0 }
  0x23   : > { %p3254_p13 = pneg %p3707_p10  ;;  %s3544_s17 = smov [#allocation11]  }
  0x24   : > { %s3718_s19 = scalar_select %p296_p11, %s3520_s21, %s298_s30  }
  0x25   : > { %s374_s28 = sshll.u32 %s3544_s17, 4  ;;  %p3255_p0 = pnand %p3711_p12, %p3254_p13  ;;  %s375_s28 = int_to_ptr.vmem [resolvable:$true] %s374_s28 }
  0x26   : > { %4253 = sst [smem:[#allocation29_spill]] %s3718_s19  ;;  %s3427_s27 = scalar_lea.vmem %s375_s28, 16 }
  0x27   : > { %p3418_p1 = pneg %p3255_p0  ;;  %p3428_p2 = scmp.ne.s32.totalorder %s375_s28, %s3427_s27 }
  0x28   : > { %s3434_s23 = scalar_lea.vmem %s375_s28, 32  ;;  %p3435_p6 = scmp.lt.s32.totalorder %s375_s28, %s375_s28 }
  0x29   : > { %p3430_p3 = pnand %p3428_p2, %p3418_p1  ;;  %p3436_p8 = scmp.lt.s32.totalorder %s3434_s23, %s3427_s27 }
  0x2b   : > { %p3431_p4 = pneg %p3430_p3  ;;  %p3437_p9 = por %p3436_p8, %p3435_p6 }
  0x2d   : > { %p3438_p7 = pnand %p3437_p9, %p3431_p4 }
  0x2f   : > { %3441 = shalt.err (!%p3438_p7)
}
  0x30   : > { %s4254_s6 = sld [smem:[#allocation32_spill]] }
  0x32   : > { %418 = sbr.rel (%p3707_p10) target bundleno = 2509 (0x9cd), region = 64 }
  0x36   : > { %3257 = dma.hbm_to_vmem [thread:$0]  (!%p3255_p0), %s4254_s6, 16, %s375_s28, [#allocation12]  }
  0x37   : > { %3503 = dma.done.wait (%p3711_p12), [#allocation12], 16  }
  0x38   : > { %3505 = vsyncadd (%p3711_p12), [#allocation12], 4294967280  ;;  %p474_p7 = scmp.lt.s32.totalorder %s3528_s0, 1  ;;  %s4229_s30 = sand.u32 1, %s3516_s20  }
  0x39   : > { %s473_s28 = sld [smem:[#allocation9 + %s3524_s22]]  ;;  %s3736_s13 = sshll.u32 %s4229_s30, 3 }
  0x3a   : > { %s475_s15 = scalar_select %p474_p7, %s3528_s0, 1 }
  0x3b   : > { %s484_s17 = sld [smem:[#allocation9 + %s3524_s22]]  ;;  %s461_s0 = scalar_lea.vmem [#allocation14], %s3736_s13 }
  0x3c   : > { %s3741_s18 = sld [smem:[#allocation9 + %s3524_s22]]  ;;  %s2833_s27 = sshll.u32 %s475_s15, 1 }
  0x3d   : > { %s3744_s26 = sld [smem:[#allocation10 + %s3524_s22]] }
  0x3e   : > { %s4255_s2 = sld [smem:[#allocation30_spill]] }
  0x3f   : > { %p476_p10 = scmp.lt.s32.totalorder %s473_s28, 1 }
  0x41   : > { %s4280_s28 = smov (!%p476_p10, %s473_s28), 1  ;;  %p487_p11 = scmp.lt.s32.totalorder %s484_s17, 1 }
  0x42   : > { %s479_s23 = sadd.s32 %s2833_s27, %s4280_s28 }
  0x43   : > { %s2834_s25 = sshll.u32 %s479_s23, 3  ;;  %s4282_s17 = smov (!%p487_p11, %s484_s17), 1 }
  0x44   : > { %s3749_s24 = scalar_lea.vmem %s4255_s2, %s2834_s25  ;;  %s490_s30 = sadd.s32 %s2833_s27, %s4282_s17 }
  0x45   : > { %s2836_s19 = sshll.u32 %s490_s30, 3  ;;  %p2837_p12 = scmp.ne.s32.totalorder %s3744_s26, 0 }
  0x46   : > { %s3754_s20 = scalar_lea.vmem %s4220_s14, %s2836_s19  ;;  %s4256_s3 = sld [smem:[#allocation31_spill]] (!%p2837_p12) }
  0x47   : > { %501 = sbr.rel (%p2837_p12) target bundleno = 294 (0x126), region = 72 }
  0x4c   : > { %vm782_vm0 = vcmask 7168   ;;  %vm791_vm1 = vcmask 64512   ;;  %v3545_v0 = vmov 0.0   ;;  %v3546_v1 = vmov -inf   ;;  %v3344_v2 = vld [vmem:[%s4256_s3 + $0x8] sm:$0xff]   ;;  %v3345_v3 = vld [vmem:[%s4256_s3 + $0x18] sm:$0xff]  }
  0x4d   : > { %3038 = vmatprep.subr.bf16.mxu0 %v3545_v0  ;;  %783 = vst.msk [vmem:[#allocation5] sm:$0xff] %vm782_vm0, %v3546_v1  ;;  %784 = vst.msk [vmem:[#allocation5 + $0x8] sm:$0xff] %vm782_vm0, %v3546_v1  ;;  %3046 = vmatprep.subr.bf16.mxu1 %v3545_v0  ;;  %vm3547_vm2 = vmmov 0   ;;  %v3346_v4 = vld [vmem:[%s4256_s3] sm:$0xff]   ;;  %v3347_v5 = vld [vmem:[%s4256_s3 + $0x10] sm:$0xff]   ;;  %vm527_vm3 = vcmask 261120  }
  0x4e   : > { %785 = vst.msk [vmem:[#allocation5 + $0x10] sm:$0xff] %vm782_vm0, %v3546_v1  ;;  %786 = vst.msk [vmem:[#allocation5 + $0x18] sm:$0xff] %vm782_vm0, %v3546_v1  ;;  %3042 = vmatprep.mubr.msk.bf16.mxu0 %vm3547_vm2, %v3545_v0  ;;  %3050 = vmatprep.mubr.msk.bf16.mxu1 %vm3547_vm2, %v3545_v0  ;;  %v502_v6 = vld [vmem:[%s3749_s24] sm:$0xff]  ;;  %v3348_v8 = vld [vmem:[%s4256_s3 + $0x28] sm:$0xff]   ;;  %vm573_vm4 = vcmask 60416  }
  0x4f   : > { %787 = vst.msk [vmem:[#allocation6] sm:$0xff] %vm782_vm0, %v3545_v0  ;;  %788 = vst.msk [vmem:[#allocation6 + $0x8] sm:$0xff] %vm782_vm0, %v3545_v0  ;;  %3039 = vmatpush3.bf16.msra.mxu0 %v3344_v2  ;;  %3047 = vmatpush3.bf16.msra.mxu1 %v3345_v3  ;;  %v503_v7 = vpack.c.bf16 %v502_v6, %v502_v6  ;;  %v3349_v9 = vld [vmem:[%s4256_s3 + $0x38] sm:$0xff]   ;;  %v3350_v10 = vld [vmem:[%s4256_s3 + $0x20] sm:$0xff]  }
  0x50   : > { %789 = vst.msk [vmem:[#allocation6 + $0x10] sm:$0xff] %vm782_vm0, %v3545_v0  ;;  %790 = vst.msk [vmem:[#allocation6 + $0x18] sm:$0xff] %vm782_vm0, %v3545_v0  ;;  %3040 = vmatprep.subr.bf16.mxu0 %v3545_v0  ;;  %3048 = vmatprep.subr.bf16.mxu1 %v3545_v0  ;;  %v3351_v11 = vld [vmem:[%s4256_s3 + $0x30] sm:$0xff]   ;;  %v2838_v12 = vld [vmem:[%s4210_s4] ss:$0 sm:$0xff] }
  0x51   : > { %792 = vst.msk [vmem:[#allocation7] sm:$0xff] %vm791_vm1, %v3545_v0  ;;  %793 = vst.msk [vmem:[#allocation7 + $0x8] sm:$0xff] %vm791_vm1, %v3545_v0  ;;  %v2847_v13 = vld [vmem:[%s4210_s4 + $0x1] ss:$0 sm:$0xff]  ;;  %v2856_v27 = vld [vmem:[%s4210_s4 + $0x2] ss:$0 sm:$0xff] }
  0x52   : > { %794 = vst.msk [vmem:[#allocation7 + $0x10] sm:$0xff] %vm791_vm1, %v3545_v0  ;;  %795 = vst.msk [vmem:[#allocation7 + $0x18] sm:$0xff] %vm791_vm1, %v3545_v0  ;;  %v2865_v29 = vld [vmem:[%s4210_s4 + $0x3] ss:$0 sm:$0xff] }
  0x53   : > { %3041 = vmatpush3.bf16.msra.mxu0 %v3346_v4  ;;  %3049 = vmatpush3.bf16.msra.mxu1 %v3347_v5 }
  0x54   : > { %3054 = vmatprep.subr.bf16.mxu0 %v3545_v0  ;;  %3062 = vmatprep.subr.bf16.mxu1 %v3545_v0 }
  0x56   : > { %3043 = vmatmul.mubr.msk.bf16.vlgmr.msra.gmra.mxu0 %vm527_vm3, %v503_v7  ;;  %3051 = vmatmul.mubr.msk.bf16.vlgmr.msra.gmra.mxu1 %vm527_vm3, %v503_v7 }
  0x57   : > { %3055 = vmatpush3.bf16.msra.mxu0 %v3348_v8  ;;  %3063 = vmatpush3.bf16.msra.mxu1 %v3349_v9 }
  0x58   : > { %3056 = vmatprep.subr.bf16.mxu0 %v3545_v0  ;;  %3064 = vmatprep.subr.bf16.mxu1 %v3545_v0 }
  0x59   : > { %3058 = vmatprep.mubr.msk.bf16.mxu0 %vm3547_vm2, %v3545_v0  ;;  %3066 = vmatprep.mubr.msk.bf16.mxu1 %vm3547_vm2, %v3545_v0 }
  0x5b   : > { %3057 = vmatpush3.bf16.msra.mxu0 %v3350_v10  ;;  %3065 = vmatpush3.bf16.msra.mxu1 %v3351_v11 }
  0x5e   : > { %3059 = vmatmul.mubr.msk.bf16.vlgmr.msra.gmra.mxu0 %vm527_vm3, %v503_v7  ;;  %3067 = vmatmul.mubr.msk.bf16.vlgmr.msra.gmra.mxu1 %vm527_vm3, %v503_v7 }
 0x116   : > { %v565_v14 = vpop.f32.mrf.mxu0  ;;  %v634_v16 = vpop.f32.mrf.mxu1 }
 0x117   : > { %v566_v15 = vadd.f32 %v2838_v12, %v565_v14  ;;  %v635_v17 = vadd.f32 %v2847_v13, %v634_v16 }
 0x118   : > { %v3044_v18 = vpop.f32.mrf.mxu0  ;;  %v3052_v20 = vpop.f32.mrf.mxu1 }
 0x119   : > { %v571_v19 = vmul.f32 0.35355338, %v566_v15  ;;  %v640_v21 = vmul.f32 0.35355338, %v635_v17 }
 0x11a   : > { %v568_v22 = vpop.f32.mrf.mxu0  ;;  %v637_v24 = vpop.f32.mrf.mxu1 }
 0x11b   : > { %v572_v23 = vpack.c.bf16 %v571_v19, %v571_v19  ;;  %v641_v25 = vpack.c.bf16 %v640_v21, %v640_v21 }
 0x11c   : > { %v3045_v26 = vpop.f32.mrf.mxu0  ;;  %v3053_v28 = vpop.f32.mrf.mxu1 }
 0x11d   : > { %574 = vst.msk [vmem:[#allocation2] sm:$0xf] %vm573_vm4, %v572_v23  ;;  %643 = vst.msk [vmem:[#allocation2 + $0x4] sm:$0xf] %vm573_vm4, %v641_v25 }
 0x11e   : > { %v703_v30 = vpop.f32.mrf.mxu0  ;;  %v772_v32 = vpop.f32.mrf.mxu1 }
 0x11f   : > { %v704_v31 = vadd.f32 %v2856_v27, %v703_v30  ;;  %v773_v33 = vadd.f32 %v2865_v29, %v772_v32 }
 0x120   : > { %v3060_v34 = vpop.f32.mrf.mxu0  ;;  %v3068_v36 = vpop.f32.mrf.mxu1 }
 0x121   : > { %v709_v35 = vmul.f32 0.35355338, %v704_v31  ;;  %v778_v37 = vmul.f32 0.35355338, %v773_v33 }
 0x122   : > { %v706_v38 = vpop.f32.mrf.mxu0  ;;  %v775_v40 = vpop.f32.mrf.mxu1 }
 0x123   : > { %v710_v39 = vpack.c.bf16 %v709_v35, %v709_v35  ;;  %v779_v41 = vpack.c.bf16 %v778_v37, %v778_v37 }
 0x124   : > { %v3061_v42 = vpop.f32.mrf.mxu0  ;;  %v3069_v43 = vpop.f32.mrf.mxu1 }
 0x125   : > { %712 = vst.msk [vmem:[#allocation2 + $0x8] sm:$0xf] %vm573_vm4, %v710_v39  ;;  %781 = vst.msk [vmem:[#allocation2 + $0xc] sm:$0xf] %vm573_vm4, %v779_v41 }
 0x126 PF: > { %p2869_p13 = scmp.ne.s32.totalorder %s3744_s26, %s3741_s18 }
 0x127   : > { %s2957_s23 = sshll.u32 (!%p2869_p13), %s3744_s26, 4 }
 0x128   : > { %798 = sbr.rel (%p2869_p13) target bundleno = 1414 (0x586), region = 76  ;;  %s3904_s25 = scalar_lea.vmem (!%p2869_p13), [#allocation3], %s2957_s23 }
 0x129   : > { %s3920_s21 = scalar_lea.vmem (!%p2869_p13), [#allocation4], %s2957_s23 }
 0x12d   : > { %v3354_v44 = vld [vmem:[%s4211_s5 + $0x8] sm:$0xff]   ;;  %v3548_v45 = vmov 0.0   ;;  %v3355_v46 = vld [vmem:[%s4211_s5] sm:$0xff]   ;;  %vm3549_vm5 = vmmov 0   ;;  %vm882_vm6 = vcmask 1043456   ;;  %vm824_vm7 = vcmask 261120  }
 0x12e   : > { %3070 = vmatprep.subr.bf16.mxu0 %v3548_v45  ;;  %3078 = vmatprep.subr.bf16.mxu1 %v3548_v45  ;;  %v799_v47 = vld [vmem:[%s3749_s24] sm:$0xff]  ;;  %v2870_v53 = vld [vmem:[#allocation11] ss:$0 sm:$0xff]  ;;  %vm868_vm8 = vcmask 64512   ;;  %v2895_v55 = vld [vmem:[%s4213_s7 + $0x8] sm:$0xf] }
 0x12f   : > { %3071 = vmatpush3.bf16.msra.mxu0 %v3354_v44  ;;  %3074 = vmatprep.mubr.msk.bf16.mxu0 %vm3549_vm5, %v3548_v45  ;;  %v2881_v48 = vld [vmem:[%s4213_s7 + $0x4] sm:$0xf]  ;;  %v800_v49 = vpack.c.bf16 %v799_v47, %v799_v47  ;;  %v871_v51 = vld [vmem:[%s4213_s7] sm:$0xf]  ;;  %v1113_v60 = vsel %vm882_vm6, %v2895_v55, 0  ;;  %vm981_vm9 = vcmask 60416  }
 0x130   : > { %3072 = vmatprep.subr.bf16.mxu0 %v3548_v45  ;;  %3080 = vmatprep.mubr.msk.bf16.mxu1 %vm3549_vm5, %v3548_v45  ;;  %v998_v50 = vsel %vm882_vm6, %v2881_v48, 0  ;;  %v884_v52 = vsel %vm882_vm6, %v871_v51, 0  ;;  %v926_v56 = vld [vmem:[%s4215_s9] sm:$0xf]  ;;  %v2909_v0 = vld [vmem:[%s4213_s7 + $0xc] sm:$0xf] }
 0x131   : > { %3079 = vmatpush3.bf16.msra.mxu1 %v884_v52  ;;  %v935_v61 = vsel %vm882_vm6, %v926_v56, 0  ;;  %v2885_v1 = vld [vmem:[%s4215_s9 + $0x4] sm:$0xf]  ;;  %v1228_v2 = vsel %vm882_vm6, %v2909_v0, 0  ;;  %v2899_v4 = vld [vmem:[%s4215_s9 + $0x8] sm:$0xf] }
 0x132   : > { %3084 = vmatprep.subr.bf16.mxu1 %v3548_v45  ;;  %v1051_v3 = vsel %vm882_vm6, %v2885_v1, 0  ;;  %v1166_v5 = vsel %vm882_vm6, %v2899_v4, 0  ;;  %v2913_v6 = vld [vmem:[%s4215_s9 + $0xc] sm:$0xf]  ;;  %v2874_v8 = vld [vmem:[%s4214_s8] ss:$0 sm:$0xff] }
 0x133   : > { %3073 = vmatpush3.bf16.msra.mxu0 %v3355_v46  ;;  %v1281_v7 = vsel %vm882_vm6, %v2913_v6, 0  ;;  %v2883_v9 = vld [vmem:[%s4214_s8 + $0x1] ss:$0 sm:$0xff]  ;;  %v2876_v22 = vld [vmem:[%s4216_s10] ss:$0 sm:$0xff]  ;;  %vm1627_vm11 = vcmask 7168  }
 0x134   : > { %3090 = vmatprep.subr.bf16.mxu0 %v3548_v45  ;;  %v2897_v23 = vld [vmem:[%s4214_s8 + $0x2] ss:$0 sm:$0xff]  ;;  %v2887_v40 = vld [vmem:[%s4216_s10 + $0x1] ss:$0 sm:$0xff]  ;;  %v2911_v41 = vld [vmem:[%s4214_s8 + $0x3] ss:$0 sm:$0xff] }
 0x136   : > { %3075 = vmatmul.mubr.msk.bf16.vlgmr.msra.gmra.mxu0 %vm824_vm7, %v800_v49  ;;  %v1340_v49 = vld [vmem:[#allocation2] sm:$0xf] }
 0x137   : > { %3091 = vmatpush3.bf16.msra.mxu0 %v998_v50  ;;  %3092 = vmatprep.mubr.msk.bf16.mxu0 %vm3549_vm5, %v3548_v45  ;;  %v1341_v50 = vld [vmem:[#allocation2 + $0x4] sm:$0xf] }
 0x138   : > { %3102 = vmatprep.subr.bf16.mxu0 %v3548_v45 }
 0x1f6   : > { %v862_v54 = vpop.f32.mrf.mxu0 }
 0x1f7   : > { %v863_v57 = vadd.f32 %v2870_v53, %v862_v54 }
 0x1f8   : > { %v3076_v58 = vpop.f32.mrf.mxu0 }
 0x1f9   : > { %869 = vst.msk [vmem:[%s3754_s20] sm:$0xff] %vm868_vm8, %v863_v57  ;;  %v870_v59 = vpack.c.bf16 %v863_v57, %v863_v57 }
 0x1fa   : > { %v865_v62 = vpop.f32.mrf.mxu0 }
 0x1fb   : > { %3081 = vmatmul.mubr.msk.bf16.vlgmr.msra.gmra.mxu1 %vm868_vm8, %v870_v59  ;;  %3093 = vmatmul.mubr.msk.bf16.vlgmr.msra.gmra.mxu0 %vm868_vm8, %v870_v59 }
 0x1fc   : > { %v3077_v63 = vpop.f32.mrf.mxu0  ;;  %3103 = vmatpush3.bf16.msra.mxu0 %v1113_v60  ;;  %3085 = vmatpush3.bf16.msra.mxu1 %v935_v61 }
 0x1fd   : > { %3086 = vmatprep.mubr.msk.bf16.mxu1 %vm3549_vm5, %v3548_v45  ;;  %3104 = vmatprep.mubr.msk.bf16.mxu0 %vm3549_vm5, %v3548_v45  ;;  %v1342_v63 = vld [vmem:[#allocation2 + $0x8] sm:$0xf] }
 0x1fe   : > { %3114 = vmatprep.subr.bf16.mxu0 %v3548_v45  ;;  %3096 = vmatprep.subr.bf16.mxu1 %v3548_v45 }
 0x203   : > { %3087 = vmatmul.mubr.msk.bf16.vlgmr.msra.gmra.mxu1 %vm868_vm8, %v870_v59  ;;  %3105 = vmatmul.mubr.msk.bf16.vlgmr.msra.gmra.mxu0 %vm868_vm8, %v870_v59 }
 0x204   : > { %3115 = vmatpush3.bf16.msra.mxu0 %v1228_v2  ;;  %3097 = vmatpush3.bf16.msra.mxu1 %v1051_v3 }
 0x205   : > { %3098 = vmatprep.mubr.msk.bf16.mxu1 %vm3549_vm5, %v3548_v45  ;;  %3116 = vmatprep.mubr.msk.bf16.mxu0 %vm3549_vm5, %v3548_v45 }
 0x206   : > { %3108 = vmatprep.subr.bf16.mxu1 %v3548_v45  ;;  %3126 = vmatprep.subr.bf16.mxu0 %v3548_v45 }
 0x20b   : > { %3099 = vmatmul.mubr.msk.bf16.vlgmr.msra.gmra.mxu1 %vm868_vm8, %v870_v59  ;;  %3117 = vmatmul.mubr.msk.bf16.vlgmr.msra.gmra.mxu0 %vm868_vm8, %v870_v59 }
 0x20c   : > { %3109 = vmatpush3.bf16.msra.mxu1 %v1166_v5  ;;  %3110 = vmatprep.mubr.msk.bf16.mxu1 %vm3549_vm5, %v3548_v45 }
 0x20d   : > { %3120 = vmatprep.subr.bf16.mxu1 %v3548_v45  ;;  %3128 = vmatprep.mubr.msk.bf16.mxu0 %vm3549_vm5, %v3548_v45 }
 0x213   : > { %3111 = vmatmul.mubr.msk.bf16.vlgmr.msra.gmra.mxu1 %vm868_vm8, %v870_v59 }
 0x214   : > { %3121 = vmatpush3.bf16.msra.mxu1 %v1281_v7  ;;  %3122 = vmatprep.mubr.msk.bf16.mxu1 %vm3549_vm5, %v3548_v45  ;;  %v2915_v7 = vld [vmem:[%s4216_s10 + $0x3] ss:$0 sm:$0xff] }
 0x215   : > { %3132 = vmatprep.subr.bf16.mxu1 %v3548_v45 }
 0x21b   : > { %3123 = vmatmul.mubr.msk.bf16.vlgmr.msra.gmra.mxu1 %vm868_vm8, %v870_v59  ;;  %v2901_v59 = vld [vmem:[%s4216_s10 + $0x2] ss:$0 sm:$0xff] }
 0x21c   : > { %3134 = vmatprep.mubr.msk.bf16.mxu1 %vm3549_vm5, %v3548_v45 }
 0x2bb   : > { %v920_v10 = vpop.f32.mrf.mxu1  ;;  %v1034_v11 = vpop.f32.mrf.mxu0 }
 0x2bc   : > { %v921_v12 = vadd.f32 %v2874_v8, %v920_v10  ;;  %v1035_v13 = vadd.f32 %v2883_v9, %v1034_v11  ;;  %v1343_v11 = vld [vmem:[#allocation2 + $0xc] sm:$0xf] }
 0x2bd   : > { %v3082_v14 = vpop.f32.mrf.mxu1  ;;  %v3094_v15 = vpop.f32.mrf.mxu0 }
 0x2be   : > { %v977_v16 = vpack.c.bf16 %v921_v12, %v921_v12  ;;  %v1093_v17 = vpack.c.bf16 %v1035_v13, %v1035_v13 }
 0x2bf   : > { %v923_v18 = vpop.f32.mrf.mxu1  ;;  %v1037_v19 = vpop.f32.mrf.mxu0 }
 0x2c0   : > { %982 = vst.msk [vmem:[%s3904_s25] sm:$0xf] %vm981_vm9, %v977_v16  ;;  %2891 = vst.msk [vmem:[%s3904_s25 + $0x4] sm:$0xf] %vm981_vm9, %v1093_v17  ;;  %v1528_v17 = vlaneseq }
 0x2c1   : > { %v3083_v20 = vpop.f32.mrf.mxu1  ;;  %v3095_v21 = vpop.f32.mrf.mxu0 }
 0x2c2   : > { %v1529_v18 = vshrl.u32 %v1528_v17, 7  ;;  %v1531_v19 = vand.u32 127, %v1528_v17 }
 0x2c3   : > { %v971_v24 = vpop.f32.mrf.mxu1  ;;  %v1149_v25 = vpop.f32.mrf.mxu0 }
 0x2c4   : > { %v972_v26 = vadd.f32 %v2876_v22, %v971_v24  ;;  %v1150_v27 = vadd.f32 %v2897_v23, %v1149_v25  ;;  %vm1532_vm10 = vcmp.le.s32.totalorder %v1531_v19, %v1529_v18 }
 0x2c5   : > { %v3088_v28 = vpop.f32.mrf.mxu1  ;;  %v3106_v29 = vpop.f32.mrf.mxu0 }
 0x2c6   : > { %v983_v30 = vpack.c.bf16 %v972_v26, %v972_v26  ;;  %v1208_v31 = vpack.c.bf16 %v1150_v27, %v1150_v27 }
 0x2c7   : > { %v974_v32 = vpop.f32.mrf.mxu1  ;;  %v1152_v33 = vpop.f32.mrf.mxu0  ;;  %v1332_v34 = vld [vmem:[%s3904_s25] sm:$0xf]  ;;  %v1333_v35 = vld [vmem:[%s3904_s25 + $0x4] sm:$0xf] }
 0x2c8   : > { %986 = vst.msk [vmem:[%s3920_s21] sm:$0xf] %vm981_vm9, %v983_v30  ;;  %2905 = vst.msk [vmem:[%s3904_s25 + $0x8] sm:$0xf] %vm981_vm9, %v1208_v31  ;;  %v1348_v36 = vsel %vm868_vm8, %v1332_v34, 0  ;;  %v1394_v37 = vsel %vm868_vm8, %v1333_v35, 0 }
 0x2c9   : > { %v3089_v38 = vpop.f32.mrf.mxu1  ;;  %v3107_v39 = vpop.f32.mrf.mxu0  ;;  %3127 = vmatpush3.bf16.xpose.msra.mxu0 %v1348_v36  ;;  %3133 = vmatpush3.bf16.xpose.msra.mxu1 %v1394_v37 }
 0x2ca   : > { %3138 = vmatprep.subr.bf16.mxu0 %v3548_v45  ;;  %3144 = vmatprep.subr.bf16.mxu1 %v3548_v45  ;;  %v3550_v38 = vmov 0  }
 0x2cb   : > { %v1087_v42 = vpop.f32.mrf.mxu1  ;;  %v1264_v43 = vpop.f32.mrf.mxu0  ;;  %3352 = vset.pattern.permute.xlu0 %v3550_v38  ;;  %3353 = vset.pattern.permute.xlu1 %v3550_v38 }
 0x2cc   : > { %v1088_v44 = vadd.f32 %v2887_v40, %v1087_v42  ;;  %v1265_v46 = vadd.f32 %v2911_v41, %v1264_v43 }
 0x2cd   : > { %v3100_v47 = vpop.f32.mrf.mxu1  ;;  %v3118_v48 = vpop.f32.mrf.mxu0 }
 0x2ce   : > { %v1098_v51 = vpack.c.bf16 %v1088_v44, %v1088_v44  ;;  %v1323_v52 = vpack.c.bf16 %v1265_v46, %v1265_v46  ;;  %v1539_v46 = vld [vmem:[#allocation5] sm:$0xff] }
 0x2cf   : > { %v1090_v53 = vpop.f32.mrf.mxu1  ;;  %v1267_v54 = vpop.f32.mrf.mxu0  ;;  %v1334_v55 = vld [vmem:[%s3904_s25 + $0x8] sm:$0xf]  ;;  %v1336_v0 = vld [vmem:[%s3920_s21] sm:$0xf] }
 0x2d0   : > { %2894 = vst.msk [vmem:[%s3920_s21 + $0x4] sm:$0xf] %vm981_vm9, %v1098_v51  ;;  %2919 = vst.msk [vmem:[%s3904_s25 + $0xc] sm:$0xf] %vm981_vm9, %v1323_v52  ;;  %3129 = vmatmul.mubr.msk.bf16.vlgmr.msra.gmra.mxu0 %vm868_vm8, %v1340_v49  ;;  %v1440_v56 = vsel %vm868_vm8, %v1334_v55, 0  ;;  %3135 = vmatmul.mubr.msk.bf16.vlgmr.msra.gmra.mxu1 %vm868_vm8, %v1341_v50  ;;  %v1668_v5 = vsel %vm882_vm6, %v1336_v0, 0 }
 0x2d1   : > { %v3101_v57 = vpop.f32.mrf.mxu1  ;;  %v3119_v58 = vpop.f32.mrf.mxu0  ;;  %3139 = vmatpush3.bf16.xpose.msra.mxu0 %v1440_v56  ;;  %3140 = vmatprep.mubr.msk.bf16.mxu0 %vm3549_vm5, %v3548_v45  ;;  %v3985_v49 = vld [vmem:[#allocation5 + $0x8] sm:$0xff]  ;;  %v1541_v54 = vld [vmem:[#allocation5 + $0x10] sm:$0xff] }
 0x2d2   : > { %3150 = vmatprep.subr.bf16.mxu0 %v3548_v45  ;;  %3146 = vmatprep.mubr.msk.bf16.mxu1 %vm3549_vm5, %v3548_v45 }
 0x2d3   : > { %v1202_v60 = vpop.f32.mrf.mxu1 }
 0x2d4   : > { %v1203_v61 = vadd.f32 %v2901_v59, %v1202_v60  ;;  %v1542_v59 = vld [vmem:[#allocation5 + $0x18] sm:$0xff] }
 0x2d5   : > { %v3112_v62 = vpop.f32.mrf.mxu1 }
 0x2d6   : > { %v1213_v1 = vpack.c.bf16 %v1203_v61, %v1203_v61 }
 0x2d7   : > { %v1205_v2 = vpop.f32.mrf.mxu1  ;;  %v1335_v3 = vld [vmem:[%s3904_s25 + $0xc] sm:$0xf]  ;;  %v1337_v12 = vld [vmem:[%s3920_s21 + $0x4] sm:$0xf] }
 0x2d8   : > { %2908 = vst.msk [vmem:[%s3920_s21 + $0x8] sm:$0xf] %vm981_vm9, %v1213_v1  ;;  %3141 = vmatmul.mubr.msk.bf16.vlgmr.msra.gmra.mxu0 %vm868_vm8, %v1342_v63  ;;  %v1486_v4 = vsel %vm868_vm8, %v1335_v3, 0  ;;  %v1714_v15 = vsel %vm882_vm6, %v1337_v12, 0 }
 0x2d9   : > { %v3113_v6 = vpop.f32.mrf.mxu1  ;;  %3145 = vmatpush3.bf16.xpose.msra.mxu1 %v1486_v4  ;;  %3151 = vmatpush3.bf16.msra.mxu0 %v1668_v5 }
 0x2da   : > { %3156 = vmatprep.subr.bf16.mxu1 %v3548_v45  ;;  %3152 = vmatprep.mubr.msk.bf16.mxu0 %vm3549_vm5, %v3548_v45 }
 0x2db   : > { %v1317_v8 = vpop.f32.mrf.mxu1  ;;  %3162 = vmatprep.subr.bf16.mxu0 %v3548_v45 }
 0x2dc   : > { %v1318_v9 = vadd.f32 %v2915_v7, %v1317_v8 }
 0x2dd   : > { %v3124_v10 = vpop.f32.mrf.mxu1 }
 0x2de   : > { %v1328_v13 = vpack.c.bf16 %v1318_v9, %v1318_v9 }
 0x2df   : > { %v1320_v14 = vpop.f32.mrf.mxu1  ;;  %v1338_v12 = vld [vmem:[%s3920_s21 + $0x8] sm:$0xf] }
 0x2e0   : > { %2922 = vst.msk [vmem:[%s3920_s21 + $0xc] sm:$0xf] %vm981_vm9, %v1328_v13  ;;  %3147 = vmatmul.mubr.msk.bf16.vlgmr.msra.gmra.mxu1 %vm868_vm8, %v1343_v11  ;;  %v1760_v17 = vsel %vm882_vm6, %v1338_v12, 0 }
 0x2e1   : > { %v3125_v16 = vpop.f32.mrf.mxu1  ;;  %3157 = vmatpush3.bf16.msra.mxu1 %v1714_v15  ;;  %3158 = vmatprep.mubr.msk.bf16.mxu1 %vm3549_vm5, %v3548_v45 }
 0x2e2   : > { %3168 = vmatprep.subr.bf16.mxu1 %v3548_v45 }
 0x2e7   : > { %v1339_v19 = vld [vmem:[%s3920_s21 + $0xc] sm:$0xf] }
 0x390   : > { %v1384_v20 = vpop.f32.mrf.mxu0  ;;  %v1430_v21 = vpop.f32.mrf.mxu1 }
 0x391   : > { %v1535_v22 = vsel %vm1532_vm10, %v1384_v20, -1e+30  ;;  %v3976_v23 = vsel %vm1532_vm10, %v1430_v21, -1e+30 }
 0x392   : > { %v3130_v24 = vpop.f32.mrf.mxu0  ;;  %v1543_v25 = vsel %vm868_vm8, %v1535_v22, -inf  ;;  %v3136_v26 = vpop.f32.mrf.mxu1  ;;  %v1546_v29 = vsel %vm868_vm8, %v3976_v23, -inf }
 0x393   : > { %1544 = vmax.xlane.f32.xlu0 %v1543_v25 }
 0x394   : > { %v1387_v27 = vpop.f32.mrf.mxu0  ;;  %v1433_v28 = vpop.f32.mrf.mxu1 }
 0x396   : > { %v3131_v30 = vpop.f32.mrf.mxu0  ;;  %v3137_v31 = vpop.f32.mrf.mxu1 }
 0x397   : > { %1547 = vmax.xlane.f32.xlu0 %v1546_v29 }
 0x398   : > { %v1476_v32 = vpop.f32.mrf.mxu0 }
 0x399   : > { %v1537_v33 = vsel %vm1532_vm10, %v1476_v32, -1e+30 }
 0x39a   : > { %v3142_v34 = vpop.f32.mrf.mxu0  ;;  %v1549_v35 = vsel %vm868_vm8, %v1537_v33, -inf }
 0x39b   : > { %1550 = vmax.xlane.f32.xlu1 %v1549_v35  ;;  %v1603_v34 = vld [vmem:[#allocation6] sm:$0xff] }
 0x39c   : > { %v1479_v36 = vpop.f32.mrf.mxu0 }
 0x39e   : > { %v3143_v37 = vpop.f32.mrf.mxu0 }
 0x39f   : > { %v1604_v37 = vld [vmem:[#allocation6 + $0x8] sm:$0xff] }
 0x3a0   : > { %v1522_v39 = vpop.f32.mrf.mxu1 }
 0x3a1   : > { %v1538_v40 = vsel %vm1532_vm10, %v1522_v39, -1e+30 }
 0x3a2   : > { %v3148_v41 = vpop.f32.mrf.mxu1  ;;  %v1552_v42 = vsel %vm868_vm8, %v1538_v40, -inf }
 0x3a3   : > { %1553 = vmax.xlane.f32.xlu1 %v1552_v42 }
 0x3a4   : > { %v1525_v43 = vpop.f32.mrf.mxu1 }
 0x3a5   : > { %v1605_v43 = vld [vmem:[#allocation6 + $0x10] sm:$0xff] }
 0x3a6   : > { %v3149_v44 = vpop.f32.mrf.mxu1 }
 0x3a7   : > { %v1632_v44 = vld [vmem:[#allocation7] sm:$0xff] }
 0x41c   : > { %v1545_v47 = vpop.xlane.xlu0 %1544 }
 0x41d   : > { %v1555_v48 = vmax.f32 %v1539_v46, %v1545_v47 }
 0x41f   : > { %v1559_v50 = vsub.f32 %v1539_v46, %v1555_v48  ;;  %1856 = vst.msk [vmem:[#allocation5] sm:$0xff] %vm1627_vm11, %v1555_v48  ;;  %1573 = vperm.xlu0 %3352, %v1555_v48   ;;  %v1606_v48 = vld [vmem:[#allocation6 + $0x18] sm:$0xff] }
 0x420   : > { %v1548_v51 = vpop.xlane.xlu0 %1547 }
 0x421   : > { %v1563_v52 = vmul.f32 1.442695, %v1559_v50  ;;  %v1556_v53 = vmax.f32 %v3985_v49, %v1548_v51  ;;  %v1633_v51 = vld [vmem:[#allocation7 + $0x8] sm:$0xff] }
 0x423   : > { %3356 = vpow2.f32 %v1563_v52  ;;  %v1560_v55 = vsub.f32 %v3985_v49, %v1556_v53  ;;  %1857 = vst.msk [vmem:[#allocation5 + $0x8] sm:$0xff] %vm1627_vm11, %v1556_v53  ;;  %1578 = vperm.xlu1 %3353, %v1556_v53  }
 0x424   : > { %v1551_v56 = vpop.xlane.xlu1 %1550 }
 0x425   : > { %v1557_v57 = vmax.f32 %v1541_v54, %v1551_v56  ;;  %v1565_v25 = vmul.f32 1.442695, %v1560_v55 }
 0x427   : > { %v1561_v58 = vsub.f32 %v1541_v54, %v1557_v57  ;;  %1858 = vst.msk [vmem:[#allocation5 + $0x10] sm:$0xff] %vm1627_vm11, %v1557_v57  ;;  %1583 = vperm.xlu1 %3353, %v1557_v57  }
 0x429   : > { %v1567_v13 = vmul.f32 1.442695, %v1561_v58 }
 0x42c   : > { %v1554_v60 = vpop.xlane.xlu1 %1553 }
 0x42d   : > { %v1558_v61 = vmax.f32 %v1542_v59, %v1554_v60  ;;  %v1634_v60 = vld [vmem:[#allocation7 + $0x10] sm:$0xff] }
 0x42f   : > { %v1562_v62 = vsub.f32 %v1542_v59, %v1558_v61  ;;  %1859 = vst.msk [vmem:[#allocation5 + $0x18] sm:$0xff] %vm1627_vm11, %v1558_v61  ;;  %1588 = vperm.xlu1 %3353, %v1558_v61  }
 0x430   : > { %v3357_v63 = vpop.eup %3356 }
 0x431   : > { %v1569_v31 = vmul.f32 1.442695, %v1562_v62  ;;  %v1607_v35 = vmul.f32 %v3357_v63, %v1603_v34 }
 0x433   : > { %1638 = vperm.xlu1 %3353, %v3357_v63  }
 0x49a   : > { %v1574_v0 = vpop.permute.xlu0 %1573 }
 0x49b   : > { %v1591_v1 = vsub.f32 %v1535_v22, %v1574_v0  ;;  %v1806_v22 = vsel %vm882_vm6, %v1339_v19, 0 }
 0x49d   : > { %v1595_v2 = vmul.f32 1.442695, %v1591_v1 }
 0x49e   : > { %v1579_v3 = vpop.permute.xlu1 %1578 }
 0x49f   : > { %3358 = vpow2.f32 %v1595_v2  ;;  %v1592_v4 = vsub.f32 %v3976_v23, %v1579_v3 }
 0x4a1   : > { %v1597_v5 = vmul.f32 1.442695, %v1592_v4 }
 0x4a2   : > { %v1584_v6 = vpop.permute.xlu1 %1583 }
 0x4a3   : > { %3360 = vpow2.f32 %v1597_v5  ;;  %v1593_v7 = vsub.f32 %v1537_v33, %v1584_v6 }
 0x4a5   : > { %v1599_v8 = vmul.f32 1.442695, %v1593_v7 }
 0x4a7   : > { %3362 = vpow2.f32 %v1599_v8  ;;  %v1635_v8 = vld [vmem:[#allocation7 + $0x18] sm:$0xff] }
 0x4aa   : > { %v1589_v9 = vpop.permute.xlu1 %1588 }
 0x4ab   : > { %v1594_v10 = vsub.f32 %v1538_v40, %v1589_v9 }
 0x4ac   : > { %v3359_v11 = vpop.eup %3358 }
 0x4ad   : > { %v1601_v14 = vmul.f32 1.442695, %v1594_v10  ;;  %v1611_v15 = vsel %vm868_vm8, %v3359_v11, 0.0  ;;  %v1660_v16 = vpack.c.bf16 %v3359_v11, %v3359_v11 }
 0x4ae   : > { %1612 = vadd.xlane.f32.xlu1 %v1611_v15  ;;  %v1639_v33 = vpop.permute.xlu1 %1638 }
 0x4af   : > { %3364 = vpow2.f32 %v1601_v14  ;;  %3153 = vmatmul.mubr.msk.bf16.vlgmr.msra.gmra.mxu0 %vm868_vm8, %v1660_v16  ;;  %v1656_v50 = vmul.f32 %v1639_v33, %v1632_v44 }
 0x4b0   : > { %v3361_v18 = vpop.eup %3360  ;;  %3163 = vmatpush3.bf16.msra.mxu0 %v1760_v17  ;;  %3164 = vmatprep.mubr.msk.bf16.mxu0 %vm3549_vm5, %v3548_v45  ;;  %3366 = vpow2.f32 %v1567_v13 }
 0x4b1   : > { %v1614_v20 = vsel %vm868_vm8, %v3361_v18, 0.0  ;;  %v1661_v21 = vpack.c.bf16 %v3361_v18, %v3361_v18  ;;  %3368 = vpow2.f32 %v1565_v25 }
 0x4b2   : > { %1615 = vadd.xlane.f32.xlu0 %v1614_v20  ;;  %3370 = vpow2.f32 %v1569_v31 }
 0x4b3   : > { %3159 = vmatmul.mubr.msk.bf16.vlgmr.msra.gmra.mxu1 %vm868_vm8, %v1661_v21 }
 0x4b4   : > { %v3363_v23 = vpop.eup %3362  ;;  %3169 = vmatpush3.bf16.msra.mxu1 %v1806_v22  ;;  %3170 = vmatprep.mubr.msk.bf16.mxu1 %vm3549_vm5, %v3548_v45 }
 0x4b5   : > { %v1662_v24 = vpack.c.bf16 %v3363_v23, %v3363_v23  ;;  %v1617_v30 = vsel %vm868_vm8, %v3363_v23, 0.0 }
 0x4b7   : > { %3165 = vmatmul.mubr.msk.bf16.vlgmr.msra.gmra.mxu0 %vm868_vm8, %v1662_v24 }
 0x4bc   : > { %v3365_v26 = vpop.eup %3364 }
 0x4bd   : > { %v1663_v27 = vpack.c.bf16 %v3365_v26, %v3365_v26  ;;  %v3367_v28 = vpop.eup %3366  ;;  %v1620_v32 = vsel %vm868_vm8, %v3365_v26, 0.0 }
 0x4be   : > { %v3369_v29 = vpop.eup %3368  ;;  %v1609_v46 = vmul.f32 %v3367_v28, %v1605_v43 }
 0x4bf   : > { %1648 = vperm.xlu1 %3353, %v3367_v28   ;;  %3171 = vmatmul.mubr.msk.bf16.vlgmr.msra.gmra.mxu1 %vm868_vm8, %v1663_v27  ;;  %v3371_v45 = vpop.eup %3370  ;;  %v1608_v39 = vmul.f32 %v3369_v29, %v1604_v37 }
 0x4c0   : > { %v1610_v54 = vmul.f32 %v3371_v45, %v1606_v48 }
 0x4c8   : > { %1643 = vperm.xlu0 %3352, %v3369_v29  }
 0x4e3   : > { %1618 = vadd.xlane.f32.xlu1 %v1617_v30 }
 0x4e7   : > { %1621 = vadd.xlane.f32.xlu1 %v1620_v32 }
 0x4f8   : > { %1653 = vperm.xlu1 %3353, %v3371_v45  }
 0x537   : > { %v1613_v36 = vpop.xlane.xlu1 %1612 }
 0x538   : > { %v1623_v38 = vadd.f32 %v1613_v36, %v1607_v35 }
 0x53a   : > { %1628 = vst.msk [vmem:[#allocation6] sm:$0xff] %vm1627_vm11, %v1623_v38 }
 0x53b   : > { %v1616_v40 = vpop.xlane.xlu0 %1615  ;;  %v1649_v42 = vpop.permute.xlu1 %1648 }
 0x53c   : > { %v1624_v41 = vadd.f32 %v1616_v40, %v1608_v39  ;;  %v1658_v2 = vmul.f32 %v1649_v42, %v1634_v60 }
 0x53e   : > { %1629 = vst.msk [vmem:[#allocation6 + $0x8] sm:$0xff] %vm1627_vm11, %v1624_v41 }
 0x543   : > { %v1644_v52 = vpop.permute.xlu0 %1643 }
 0x544   : > { %v1657_v59 = vmul.f32 %v1644_v52, %v1633_v51 }
 0x56c   : > { %v1619_v47 = vpop.xlane.xlu1 %1618 }
 0x56d   : > { %v1625_v49 = vadd.f32 %v1619_v47, %v1609_v46 }
 0x56f   : > { %1630 = vst.msk [vmem:[#allocation6 + $0x10] sm:$0xff] %vm1627_vm11, %v1625_v49  ;;  %v1704_v53 = vpop.f32.mrf.mxu0 }
 0x570   : > { %v1848_v55 = vadd.f32 %v1704_v53, %v1656_v50  ;;  %v1622_v56 = vpop.xlane.xlu1 %1621 }
 0x571   : > { %v1626_v57 = vadd.f32 %v1622_v56, %v1610_v54  ;;  %v3154_v58 = vpop.f32.mrf.mxu0 }
 0x572   : > { %1852 = vst.msk [vmem:[#allocation7] sm:$0xff] %vm868_vm8, %v1848_v55 }
 0x573   : > { %1631 = vst.msk [vmem:[#allocation6 + $0x18] sm:$0xff] %vm1627_vm11, %v1626_v57  ;;  %v1707_v61 = vpop.f32.mrf.mxu0  ;;  %v1750_v62 = vpop.f32.mrf.mxu1 }
 0x574   : > { %v1849_v63 = vadd.f32 %v1750_v62, %v1657_v59  ;;  %v1654_v9 = vpop.permute.xlu1 %1653 }
 0x575   : > { %v3155_v0 = vpop.f32.mrf.mxu0  ;;  %v3160_v1 = vpop.f32.mrf.mxu1  ;;  %v1659_v12 = vmul.f32 %v1654_v9, %v1635_v8 }
 0x576   : > { %1853 = vst.msk [vmem:[#allocation7 + $0x8] sm:$0xff] %vm868_vm8, %v1849_v63 }
 0x577   : > { %v1753_v3 = vpop.f32.mrf.mxu1  ;;  %v1796_v4 = vpop.f32.mrf.mxu0 }
 0x578   : > { %v1850_v5 = vadd.f32 %v1796_v4, %v1658_v2 }
 0x579   : > { %v3161_v6 = vpop.f32.mrf.mxu1  ;;  %v3166_v7 = vpop.f32.mrf.mxu0 }
 0x57a   : > { %1854 = vst.msk [vmem:[#allocation7 + $0x10] sm:$0xff] %vm868_vm8, %v1850_v5 }
 0x57b   : > { %v1799_v10 = vpop.f32.mrf.mxu0 }
 0x57d   : > { %v3167_v11 = vpop.f32.mrf.mxu0 }
 0x57f   : > { %v1842_v13 = vpop.f32.mrf.mxu1 }
 0x580   : > { %v1851_v14 = vadd.f32 %v1842_v13, %v1659_v12 }
 0x581   : > { %v3172_v15 = vpop.f32.mrf.mxu1 }
 0x582   : > { %1855 = vst.msk [vmem:[#allocation7 + $0x18] sm:$0xff] %vm868_vm8, %v1851_v14 }
 0x583   : > { %v1845_v16 = vpop.f32.mrf.mxu1 }
 0x585   : > { %v3173_v17 = vpop.f32.mrf.mxu1 }
 0x586 PF: > { %p2931_p0 = scmp.eq.s32.totalorder %s3744_s26, %s3741_s18 }
 0x587   : > { %s2965_s25 = sshll.u32 (!%p2931_p0), %s3744_s26, 4 }
 0x588   : > { %1863 = sbr.rel (%p2931_p0) target bundleno = 2120 (0x848), region = 80  ;;  %s1866_s20 = scalar_lea.vmem (!%p2931_p0), [#allocation3], %s2965_s25 }
 0x589   : > { %s1872_s29 = scalar_lea.vmem (!%p2931_p0), [#allocation4], %s2965_s25 }
 0x58d   : > { %vm1881_vm12 = vcmask 64512   ;;  %v3551_v18 = vmov 0.0   ;;  %v1867_v19 = vld [vmem:[%s1866_s20] sm:$0xf]  ;;  %v1868_v20 = vld [vmem:[%s1866_s20 + $0x4] sm:$0xf] }
 0x58e   : > { %3174 = vmatprep.subr.bf16.mxu0 %v3551_v18  ;;  %3180 = vmatprep.subr.bf16.mxu1 %v3551_v18  ;;  %vm3552_vm13 = vmmov 0   ;;  %v1886_v21 = vsel %vm1881_vm12, %v1867_v19, 0  ;;  %v1932_v22 = vsel %vm1881_vm12, %v1868_v20, 0  ;;  %v1869_v23 = vld [vmem:[%s1866_s20 + $0x8] sm:$0xf]  ;;  %v3553_v49 = vmov 0  }
 0x58f   : > { %3176 = vmatprep.mubr.msk.bf16.mxu0 %vm3552_vm13, %v3551_v18  ;;  %3182 = vmatprep.mubr.msk.bf16.mxu1 %vm3552_vm13, %v3551_v18  ;;  %v1870_v24 = vld [vmem:[%s1866_s20 + $0xc] sm:$0xf]  ;;  %v1877_v25 = vld [vmem:[#allocation2] sm:$0xf]  ;;  %v1878_v26 = vld [vmem:[#allocation2 + $0x4] sm:$0xf] }
 0x590   : > { %3175 = vmatpush3.bf16.xpose.msra.mxu0 %v1886_v21  ;;  %3181 = vmatpush3.bf16.xpose.msra.mxu1 %v1932_v22  ;;  %v1978_v27 = vsel %vm1881_vm12, %v1869_v23, 0  ;;  %v2024_v28 = vsel %vm1881_vm12, %v1870_v24, 0  ;;  %v1879_v29 = vld [vmem:[#allocation2 + $0x8] sm:$0xf]  ;;  %v1880_v30 = vld [vmem:[#allocation2 + $0xc] sm:$0xf] }
 0x591   : > { %3186 = vmatprep.subr.bf16.mxu0 %v3551_v18  ;;  %3192 = vmatprep.subr.bf16.mxu1 %v3551_v18  ;;  %v2066_v52 = vld [vmem:[#allocation5] sm:$0xff]  ;;  %vm2154_vm14 = vcmask 7168   ;;  %v4065_v55 = vld [vmem:[#allocation5 + $0x8] sm:$0xff]  ;;  %v2068_v60 = vld [vmem:[#allocation5 + $0x10] sm:$0xff]  ;;  %vm2194_vm15 = vcmask 1043456  }
 0x592   : > { %3372 = vset.pattern.permute.xlu0 %v3553_v49  ;;  %3373 = vset.pattern.permute.xlu1 %v3553_v49  ;;  %v4076_v0 = vld [vmem:[#allocation5 + $0x18] sm:$0xff]  ;;  %v1873_v4 = vld [vmem:[%s1872_s29] sm:$0xf]  ;;  %v1874_v7 = vld [vmem:[%s1872_s29 + $0x4] sm:$0xf] }
 0x593   : > { %v2196_v6 = vsel %vm2194_vm15, %v1873_v4, 0  ;;  %v2242_v8 = vsel %vm2194_vm15, %v1874_v7, 0  ;;  %v1875_v10 = vld [vmem:[%s1872_s29 + $0x8] sm:$0xf]  ;;  %v1876_v12 = vld [vmem:[%s1872_s29 + $0xc] sm:$0xf] }
 0x594   : > { %v2288_v11 = vsel %vm2194_vm15, %v1875_v10, 0  ;;  %v2334_v13 = vsel %vm2194_vm15, %v1876_v12, 0 }
 0x597   : > { %3177 = vmatmul.mubr.msk.bf16.vlgmr.msra.gmra.mxu0 %vm1881_vm12, %v1877_v25  ;;  %3183 = vmatmul.mubr.msk.bf16.vlgmr.msra.gmra.mxu1 %vm1881_vm12, %v1878_v26 }
 0x598   : > { %3187 = vmatpush3.bf16.xpose.msra.mxu0 %v1978_v27  ;;  %3193 = vmatpush3.bf16.xpose.msra.mxu1 %v2024_v28 }
 0x599   : > { %3188 = vmatprep.mubr.msk.bf16.mxu0 %vm3552_vm13, %v3551_v18  ;;  %3194 = vmatprep.mubr.msk.bf16.mxu1 %vm3552_vm13, %v3551_v18 }
 0x59a   : > { %3198 = vmatprep.subr.bf16.mxu0 %v3551_v18  ;;  %3204 = vmatprep.subr.bf16.mxu1 %v3551_v18 }
 0x59f   : > { %3189 = vmatmul.mubr.msk.bf16.vlgmr.msra.gmra.mxu0 %vm1881_vm12, %v1879_v29  ;;  %3195 = vmatmul.mubr.msk.bf16.vlgmr.msra.gmra.mxu1 %vm1881_vm12, %v1880_v30 }
 0x5a0   : > { %3200 = vmatprep.mubr.msk.bf16.mxu0 %vm3552_vm13, %v3551_v18  ;;  %3206 = vmatprep.mubr.msk.bf16.mxu1 %vm3552_vm13, %v3551_v18 }
 0x5a1   : > { %3199 = vmatpush3.bf16.msra.mxu0 %v2196_v6  ;;  %3205 = vmatpush3.bf16.msra.mxu1 %v2242_v8  ;;  %v2161_v6 = vld [vmem:[#allocation7 + $0x10] sm:$0xff] }
 0x5a2   : > { %3210 = vmatprep.subr.bf16.mxu0 %v3551_v18  ;;  %3216 = vmatprep.subr.bf16.mxu1 %v3551_v18 }
 0x657   : > { %v4049_v31 = vpop.f32.mrf.mxu0  ;;  %v4051_v32 = vpop.f32.mrf.mxu1 }
 0x658   : > { %v2070_v45 = vsel %vm1881_vm12, %v4049_v31, -inf  ;;  %v2073_v35 = vsel %vm1881_vm12, %v4051_v32, -inf }
 0x659   : > { %v3184_v33 = vpop.f32.mrf.mxu1  ;;  %2071 = vmax.xlane.f32.xlu0 %v2070_v45  ;;  %v3178_v34 = vpop.f32.mrf.mxu0 }
 0x65b   : > { %v1925_v36 = vpop.f32.mrf.mxu0  ;;  %v1971_v37 = vpop.f32.mrf.mxu1 }
 0x65d   : > { %v3185_v38 = vpop.f32.mrf.mxu1  ;;  %2074 = vmax.xlane.f32.xlu0 %v2073_v35  ;;  %v3179_v39 = vpop.f32.mrf.mxu0 }
 0x65f   : > { %v4057_v40 = vpop.f32.mrf.mxu0  ;;  %v4059_v41 = vpop.f32.mrf.mxu1 }
 0x660   : > { %v2076_v42 = vsel %vm1881_vm12, %v4057_v40, -inf  ;;  %v2079_v46 = vsel %vm1881_vm12, %v4059_v41, -inf }
 0x661   : > { %v3196_v43 = vpop.f32.mrf.mxu1  ;;  %2077 = vmax.xlane.f32.xlu1 %v2076_v42  ;;  %v3190_v44 = vpop.f32.mrf.mxu0 }
 0x662   : > { %v2130_v44 = vld [vmem:[#allocation6] sm:$0xff] }
 0x663   : > { %v2017_v47 = vpop.f32.mrf.mxu0  ;;  %v2063_v48 = vpop.f32.mrf.mxu1 }
 0x664   : > { %v2131_v48 = vld [vmem:[#allocation6 + $0x8] sm:$0xff] }
 0x665   : > { %v3197_v50 = vpop.f32.mrf.mxu1  ;;  %2080 = vmax.xlane.f32.xlu1 %v2079_v46  ;;  %v3191_v51 = vpop.f32.mrf.mxu0 }
 0x6e2   : > { %v2072_v53 = vpop.xlane.xlu0 %2071 }
 0x6e3   : > { %v2082_v54 = vmax.f32 %v2066_v52, %v2072_v53 }
 0x6e5   : > { %v2086_v56 = vsub.f32 %v2066_v52, %v2082_v54  ;;  %2384 = vst.msk [vmem:[#allocation5] sm:$0xff] %vm2154_vm14, %v2082_v54  ;;  %2100 = vperm.xlu0 %3372, %v2082_v54   ;;  %v2132_v54 = vld [vmem:[#allocation6 + $0x10] sm:$0xff] }
 0x6e6   : > { %v2075_v57 = vpop.xlane.xlu0 %2074 }
 0x6e7   : > { %v2090_v58 = vmul.f32 1.442695, %v2086_v56  ;;  %v4069_v59 = vmax.f32 %v4065_v55, %v2075_v57 }
 0x6e9   : > { %3374 = vpow2.f32 %v2090_v58  ;;  %v2087_v61 = vsub.f32 %v4065_v55, %v4069_v59  ;;  %2385 = vst.msk [vmem:[#allocation5 + $0x8] sm:$0xff] %vm2154_vm14, %v4069_v59  ;;  %2105 = vperm.xlu1 %3373, %v4069_v59   ;;  %v2159_v55 = vld [vmem:[#allocation7] sm:$0xff]  ;;  %v2133_v58 = vld [vmem:[#allocation6 + $0x18] sm:$0xff] }
 0x6ea   : > { %v2078_v62 = vpop.xlane.xlu1 %2077 }
 0x6eb   : > { %v2084_v63 = vmax.f32 %v2068_v60, %v2078_v62  ;;  %v2092_v35 = vmul.f32 1.442695, %v2087_v61  ;;  %v2160_v61 = vld [vmem:[#allocation7 + $0x8] sm:$0xff] }
 0x6ed   : > { %v2088_v1 = vsub.f32 %v2068_v60, %v2084_v63  ;;  %2386 = vst.msk [vmem:[#allocation5 + $0x10] sm:$0xff] %vm2154_vm14, %v2084_v63  ;;  %2110 = vperm.xlu1 %3373, %v2084_v63  }
 0x6ee   : > { %v2081_v2 = vpop.xlane.xlu1 %2080 }
 0x6ef   : > { %v4080_v3 = vmax.f32 %v4076_v0, %v2081_v2  ;;  %v2094_v28 = vmul.f32 1.442695, %v2088_v1 }
 0x6f1   : > { %v2089_v5 = vsub.f32 %v4076_v0, %v4080_v3  ;;  %2387 = vst.msk [vmem:[#allocation5 + $0x18] sm:$0xff] %vm2154_vm14, %v4080_v3  ;;  %2115 = vperm.xlu1 %3373, %v4080_v3  }
 0x6f6   : > { %v3375_v9 = vpop.eup %3374 }
 0x6f7   : > { %2165 = vperm.xlu1 %3373, %v3375_v9   ;;  %v2134_v46 = vmul.f32 %v3375_v9, %v2130_v44 }
 0x760   : > { %v2101_v14 = vpop.permute.xlu0 %2100 }
 0x761   : > { %v2118_v15 = vsub.f32 %v4049_v31, %v2101_v14  ;;  %v2162_v14 = vld [vmem:[#allocation7 + $0x18] sm:$0xff] }
 0x763   : > { %v2122_v16 = vmul.f32 1.442695, %v2118_v15 }
 0x764   : > { %v2106_v17 = vpop.permute.xlu1 %2105 }
 0x765   : > { %3376 = vpow2.f32 %v2122_v16  ;;  %v2119_v19 = vsub.f32 %v4051_v32, %v2106_v17 }
 0x767   : > { %v2124_v20 = vmul.f32 1.442695, %v2119_v19 }
 0x768   : > { %v2111_v21 = vpop.permute.xlu1 %2110 }
 0x769   : > { %3378 = vpow2.f32 %v2124_v20  ;;  %v2120_v22 = vsub.f32 %v4057_v40, %v2111_v21 }
 0x76b   : > { %v2126_v23 = vmul.f32 1.442695, %v2120_v22 }
 0x76c   : > { %v2116_v24 = vpop.permute.xlu1 %2115 }
 0x76d   : > { %3380 = vpow2.f32 %v2126_v23  ;;  %v2121_v25 = vsub.f32 %v4059_v41, %v2116_v24 }
 0x76f   : > { %v2128_v26 = vmul.f32 1.442695, %v2121_v25 }
 0x771   : > { %3382 = vpow2.f32 %v2128_v26 }
 0x772   : > { %v3377_v27 = vpop.eup %3376  ;;  %3384 = vpow2.f32 %v2094_v28  ;;  %v2166_v43 = vpop.permute.xlu1 %2165 }
 0x773   : > { %v2138_v29 = vsel %vm1881_vm12, %v3377_v27, 0.0  ;;  %v2187_v30 = vpack.c.bf16 %v3377_v27, %v3377_v27  ;;  %3386 = vpow2.f32 %v2092_v35  ;;  %v2183_v60 = vmul.f32 %v2166_v43, %v2159_v55 }
 0x774   : > { %2139 = vadd.xlane.f32.xlu1 %v2138_v29 }
 0x775   : > { %3201 = vmatmul.mubr.msk.bf16.vlgmr.msra.gmra.mxu0 %vm1881_vm12, %v2187_v30 }
 0x776   : > { %v3379_v31 = vpop.eup %3378  ;;  %3211 = vmatpush3.bf16.msra.mxu0 %v2288_v11  ;;  %3212 = vmatprep.mubr.msk.bf16.mxu0 %vm3552_vm13, %v3551_v18 }
 0x777   : > { %v2141_v32 = vsel %vm1881_vm12, %v3379_v31, 0.0  ;;  %v2188_v45 = vpack.c.bf16 %v3379_v31, %v3379_v31 }
 0x778   : > { %2142 = vadd.xlane.f32.xlu0 %v2141_v32 }
 0x779   : > { %3207 = vmatmul.mubr.msk.bf16.vlgmr.msra.gmra.mxu1 %vm1881_vm12, %v2188_v45 }
 0x77a   : > { %v3381_v33 = vpop.eup %3380  ;;  %3217 = vmatpush3.bf16.msra.mxu1 %v2334_v13  ;;  %3218 = vmatprep.mubr.msk.bf16.mxu1 %vm3552_vm13, %v3551_v18  ;;  %v2096_v18 = vmul.f32 1.442695, %v2089_v5 }
 0x77b   : > { %v2189_v34 = vpack.c.bf16 %v3381_v33, %v3381_v33  ;;  %v2144_v40 = vsel %vm1881_vm12, %v3381_v33, 0.0 }
 0x77c   : > { %3388 = vpow2.f32 %v2096_v18 }
 0x77d   : > { %3213 = vmatmul.mubr.msk.bf16.vlgmr.msra.gmra.mxu0 %vm1881_vm12, %v2189_v34 }
 0x77e   : > { %v3383_v36 = vpop.eup %3382 }
 0x77f   : > { %v2190_v37 = vpack.c.bf16 %v3383_v36, %v3383_v36  ;;  %v3385_v38 = vpop.eup %3384  ;;  %v2147_v41 = vsel %vm1881_vm12, %v3383_v36, 0.0 }
 0x780   : > { %v3387_v39 = vpop.eup %3386  ;;  %v2136_v56 = vmul.f32 %v3385_v38, %v2132_v54 }
 0x781   : > { %3219 = vmatmul.mubr.msk.bf16.vlgmr.msra.gmra.mxu1 %vm1881_vm12, %v2190_v37  ;;  %v2135_v50 = vmul.f32 %v3387_v39, %v2131_v48 }
 0x785   : > { %2175 = vperm.xlu1 %3373, %v3385_v38  }
 0x789   : > { %v3389_v42 = vpop.eup %3388 }
 0x78a   : > { %v2137_v0 = vmul.f32 %v3389_v42, %v2133_v58 }
 0x78e   : > { %2170 = vperm.xlu0 %3372, %v3387_v39  }
 0x7a9   : > { %2145 = vadd.xlane.f32.xlu1 %v2144_v40 }
 0x7ad   : > { %2148 = vadd.xlane.f32.xlu1 %v2147_v41 }
 0x7be   : > { %2180 = vperm.xlu1 %3373, %v3389_v42  }
 0x7fd   : > { %v2140_v47 = vpop.xlane.xlu1 %2139 }
 0x7fe   : > { %v2150_v49 = vadd.f32 %v2140_v47, %v2134_v46 }
 0x800   : > { %2155 = vst.msk [vmem:[#allocation6] sm:$0xff] %vm2154_vm14, %v2150_v49 }
 0x801   : > { %v2143_v51 = vpop.xlane.xlu0 %2142  ;;  %v2176_v53 = vpop.permute.xlu1 %2175 }
 0x802   : > { %v2151_v52 = vadd.f32 %v2143_v51, %v2135_v50  ;;  %v2185_v12 = vmul.f32 %v2176_v53, %v2161_v6 }
 0x804   : > { %2156 = vst.msk [vmem:[#allocation6 + $0x8] sm:$0xff] %vm2154_vm14, %v2151_v52 }
 0x809   : > { %v2171_v62 = vpop.permute.xlu0 %2170 }
 0x80a   : > { %v2184_v5 = vmul.f32 %v2171_v62, %v2160_v61 }
 0x832   : > { %v2146_v57 = vpop.xlane.xlu1 %2145 }
 0x833   : > { %v2152_v59 = vadd.f32 %v2146_v57, %v2136_v56 }
 0x835   : > { %2157 = vst.msk [vmem:[#allocation6 + $0x10] sm:$0xff] %vm2154_vm14, %v2152_v59  ;;  %v2232_v63 = vpop.f32.mrf.mxu0 }
 0x836   : > { %v2376_v1 = vadd.f32 %v2232_v63, %v2183_v60  ;;  %v2149_v2 = vpop.xlane.xlu1 %2148 }
 0x837   : > { %v2153_v3 = vadd.f32 %v2149_v2, %v2137_v0  ;;  %v3202_v4 = vpop.f32.mrf.mxu0 }
 0x838   : > { %2380 = vst.msk [vmem:[#allocation7] sm:$0xff] %vm1881_vm12, %v2376_v1 }
 0x839   : > { %2158 = vst.msk [vmem:[#allocation6 + $0x18] sm:$0xff] %vm2154_vm14, %v2153_v3  ;;  %v2235_v7 = vpop.f32.mrf.mxu0  ;;  %v2278_v8 = vpop.f32.mrf.mxu1 }
 0x83a   : > { %v2377_v9 = vadd.f32 %v2278_v8, %v2184_v5  ;;  %v2181_v13 = vpop.permute.xlu1 %2180 }
 0x83b   : > { %v3203_v10 = vpop.f32.mrf.mxu0  ;;  %v3208_v11 = vpop.f32.mrf.mxu1  ;;  %v2186_v21 = vmul.f32 %v2181_v13, %v2162_v14 }
 0x83c   : > { %2381 = vst.msk [vmem:[#allocation7 + $0x8] sm:$0xff] %vm1881_vm12, %v2377_v9 }
 0x83d   : > { %v2281_v15 = vpop.f32.mrf.mxu1  ;;  %v2324_v16 = vpop.f32.mrf.mxu0 }
 0x83e   : > { %v2378_v17 = vadd.f32 %v2324_v16, %v2185_v12 }
 0x83f   : > { %v3209_v19 = vpop.f32.mrf.mxu1  ;;  %v3214_v20 = vpop.f32.mrf.mxu0 }
 0x840   : > { %2382 = vst.msk [vmem:[#allocation7 + $0x10] sm:$0xff] %vm1881_vm12, %v2378_v17 }
 0x841   : > { %v2327_v22 = vpop.f32.mrf.mxu0  ;;  %v2370_v23 = vpop.f32.mrf.mxu1 }
 0x842   : > { %v2379_v24 = vadd.f32 %v2370_v23, %v2186_v21 }
 0x843   : > { %v3215_v25 = vpop.f32.mrf.mxu0  ;;  %v3220_v26 = vpop.f32.mrf.mxu1 }
 0x844   : > { %2383 = vst.msk [vmem:[#allocation7 + $0x18] sm:$0xff] %vm1881_vm12, %v2379_v24 }
 0x845   : > { %v2373_v27 = vpop.f32.mrf.mxu1 }
 0x847   : > { %v3221_v28 = vpop.f32.mrf.mxu1 }
 0x848 PF: > { %2390 = sbr.rel (%p2869_p13) target bundleno = 2480 (0x9b0), region = 84 }
 0x84d   : > { %v2396_v29 = vld [vmem:[#allocation6 + $0x8] sm:$0xff]  ;;  %v2397_v30 = vld [vmem:[#allocation6 + $0x10] sm:$0xff]  ;;  %v3554_v31 = vmov 0   ;;  %v2395_v32 = vld [vmem:[#allocation6] sm:$0xff]  ;;  %vm2438_vm0 = vcmask 1043456   ;;  %v3555_v34 = vmov 0.0  }
 0x84e   : > { %3390 = vset.pattern.permute.xlu0 %v3554_v31  ;;  %3391 = vset.pattern.permute.xlu1 %v3554_v31  ;;  %v2398_v45 = vld [vmem:[#allocation6 + $0x18] sm:$0xff]  ;;  %v2944_v33 = vld [vmem:[%s4217_s11 + $0x4] sm:$0xf]  ;;  %vm3556_vm1 = vmmov 0   ;;  %v2431_v36 = vld [vmem:[%s4217_s11] sm:$0xf] }
 0x84f   : > { %2406 = vperm.xlu0 %3390, %v2396_v29   ;;  %2411 = vperm.xlu1 %3391, %v2397_v30   ;;  %v2440_v35 = vsel %vm2438_vm0, %v2944_v33, 0  ;;  %v2486_v37 = vsel %vm2438_vm0, %v2431_v36, 0  ;;  %v2392_v41 = vld [vmem:[#allocation7 + $0x8] sm:$0xff]  ;;  %v2947_v43 = vld [vmem:[%s4217_s11 + $0x8] sm:$0xf]  ;;  %vm2434_vm2 = vcmask 64512  }
 0x850   : > { %3222 = vmatprep.subr.bf16.mxu0 %v3555_v34  ;;  %3224 = vmatprep.mubr.msk.bf16.mxu0 %vm3556_vm1, %v3555_v34  ;;  %v2391_v47 = vld [vmem:[#allocation7] sm:$0xff]  ;;  %v2393_v48 = vld [vmem:[#allocation7 + $0x10] sm:$0xff]  ;;  %v2534_v50 = vsel %vm2438_vm0, %v2947_v43, 0  ;;  %v2949_v52 = vld [vmem:[%s4217_s11 + $0xc] sm:$0xf]  ;;  %vm2634_vm3 = vcmask 261120  }
 0x851   : > { %3223 = vmatpush3.bf16.msra.mxu0 %v2440_v35  ;;  %3228 = vmatprep.subr.bf16.mxu1 %v3555_v34  ;;  %v2583_v56 = vsel %vm2438_vm0, %v2949_v52, 0  ;;  %v2394_v58 = vld [vmem:[#allocation7 + $0x18] sm:$0xff]  ;;  %v2951_v12 = vld [vmem:[%s4218_s12] ss:$0 sm:$0xff] }
 0x852   : > { %3234 = vmatprep.subr.bf16.mxu0 %v3555_v34  ;;  %3230 = vmatprep.mubr.msk.bf16.mxu1 %vm3556_vm1, %v3555_v34 }
 0x853   : > { %2401 = vperm.xlu0 %3390, %v2395_v32   ;;  %2416 = vperm.xlu1 %3391, %v2398_v45  }
 0x854   : > { %3229 = vmatpush3.bf16.msra.mxu1 %v2486_v37 }
 0x855   : > { %3240 = vmatprep.subr.bf16.mxu1 %v3555_v34 }
 0x8ca   : > { %v2407_v38 = vpop.permute.xlu0 %2406  ;;  %v2412_v39 = vpop.permute.xlu1 %2411 }
 0x8cb   : > { %3392 = vrcp.f32 %v2407_v38 }
 0x8cc   : > { %3394 = vrcp.f32 %v2412_v39 }
 0x8ce   : > { %v2402_v40 = vpop.permute.xlu0 %2401  ;;  %v2417_v18 = vpop.permute.xlu1 %2416 }
 0x8cf   : > { %3396 = vrcp.f32 %v2402_v40 }
 0x8d0   : > { %3398 = vrcp.f32 %v2417_v18 }
 0x8d8   : > { %v3393_v42 = vpop.eup %3392 }
 0x8d9   : > { %v2422_v44 = vmul.f32 %v3393_v42, %v2392_v41  ;;  %v3395_v46 = vpop.eup %3394 }
 0x8da   : > { %v2424_v54 = vmul.f32 %v3395_v46, %v2393_v48 }
 0x8db   : > { %v2428_v49 = vpack.c.bf16 %v2422_v44, %v2422_v44 }
 0x8dc   : > { %v3397_v51 = vpop.eup %3396  ;;  %v2429_v59 = vpack.c.bf16 %v2424_v54, %v2424_v54 }
 0x8dd   : > { %3225 = vmatmul.mubr.msk.bf16.vlgmr.msra.gmra.mxu0 %vm2434_vm2, %v2428_v49  ;;  %v2420_v53 = vmul.f32 %v3397_v51, %v2391_v47  ;;  %v3399_v57 = vpop.eup %3398 }
 0x8de   : > { %3235 = vmatpush3.bf16.msra.mxu0 %v2534_v50  ;;  %3236 = vmatprep.mubr.msk.bf16.mxu0 %vm3556_vm1, %v3555_v34  ;;  %v2426_v60 = vmul.f32 %v3399_v57, %v2394_v58 }
 0x8df   : > { %v2427_v55 = vpack.c.bf16 %v2420_v53, %v2420_v53 }
 0x8e0   : > { %v2430_v61 = vpack.c.bf16 %v2426_v60, %v2426_v60 }
 0x8e1   : > { %3231 = vmatmul.mubr.msk.bf16.vlgmr.msra.gmra.mxu1 %vm2434_vm2, %v2427_v55 }
 0x8e2   : > { %3241 = vmatpush3.bf16.msra.mxu1 %v2583_v56  ;;  %3242 = vmatprep.mubr.msk.bf16.mxu1 %vm3556_vm1, %v3555_v34 }
 0x8e5   : > { %3237 = vmatmul.mubr.msk.bf16.vlgmr.msra.gmra.mxu0 %vm2434_vm2, %v2429_v59 }
 0x8e9   : > { %3243 = vmatmul.mubr.msk.bf16.vlgmr.msra.gmra.mxu1 %vm2434_vm2, %v2430_v61 }
 0x99d   : > { %v2476_v62 = vpop.f32.mrf.mxu0 }
 0x99f   : > { %v3226_v63 = vpop.f32.mrf.mxu0 }
 0x9a1   : > { %v2479_v0 = vpop.f32.mrf.mxu0  ;;  %v2522_v1 = vpop.f32.mrf.mxu1 }
 0x9a2   : > { %v2523_v6 = vadd.f32 %v2522_v1, %v2476_v62 }
 0x9a3   : > { %v3227_v2 = vpop.f32.mrf.mxu0  ;;  %v3232_v3 = vpop.f32.mrf.mxu1 }
 0x9a5   : > { %v2525_v4 = vpop.f32.mrf.mxu1  ;;  %v2570_v5 = vpop.f32.mrf.mxu0 }
 0x9a6   : > { %v2576_v9 = vadd.f32 %v2570_v5, %v2523_v6 }
 0x9a7   : > { %v3233_v7 = vpop.f32.mrf.mxu1  ;;  %v3238_v8 = vpop.f32.mrf.mxu0 }
 0x9a9   : > { %v2573_v10 = vpop.f32.mrf.mxu0  ;;  %v2619_v11 = vpop.f32.mrf.mxu1 }
 0x9aa   : > { %v2625_v13 = vadd.f32 %v2619_v11, %v2576_v9 }
 0x9ab   : > { %v3239_v14 = vpop.f32.mrf.mxu0  ;;  %v3244_v15 = vpop.f32.mrf.mxu1 }
 0x9ac   : > { %v2633_v16 = vadd.f32 %v2951_v12, %v2625_v13 }
 0x9ad   : > { %v2622_v17 = vpop.f32.mrf.mxu1 }
 0x9ae   : > { %2635 = vst.msk [vmem:[%s461_s0] sm:$0xff] %vm2634_vm3, %v2633_v16 }
 0x9af   : > { %v3245_v19 = vpop.f32.mrf.mxu1 }
 0x9b0 PF: > { %s4257_s17 = sld [smem:[#allocation22_spill]]  ;;  %s4284_s22 = smov (!%p3693_p5, %s3524_s22), 0 }
 0x9b1   : > { %s4258_s27 = sld [smem:[#allocation20_spill]]  ;;  %s2662_s29 = sshll.u32 %s461_s0, 4  ;;  %s2663_s29 = int_to_ptr.vmem [resolvable:$true] %s2662_s29 }
 0x9b2   : > { %s3250_s23 = scalar_select %p3693_p5, [#allocation9], [#allocation15] }
 0x9b3   : > { %s4259_s21 = sld [smem:[#allocation33_spill]]  ;;  %s3442_s15 = scalar_lea.vmem %s2663_s29, 128 }
 0x9b4   : > { %s2653_s25 = sld [smem:[%s3250_s23 + %s4284_s22]]  ;;  %p3443_p1 = scmp.ne.s32.totalorder %s2663_s29, %s3442_s15 }
 0x9b5   : > { %s3557_s2 = smov [#allocation14]  }
 0x9b6   : > { %s2953_s20 = sshll.u32 %s4257_s17, 1  ;;  %p3444_p2 = pnand %p3443_p1, %p3693_p5 }
 0x9b7   : > { %s4261_s28 = sand.u32 1, %s4258_s27   ;;  %s3446_s3 = sshll.u32 %s3557_s2, 4  ;;  %s3447_s3 = int_to_ptr.vmem [resolvable:$false] %s3446_s3 }
 0x9b8   : > { %s2637_s24 = scalar_lea.sflag [#allocation13], %s4261_s28  ;;  %p3445_p3 = pneg %p3444_p2 }
 0x9b9   : > { %s4260_s30 = smov %s4259_s21  ;;  %s3448_s22 = scalar_lea.vmem %s3447_s3, 256 }
 0x9ba   : > { %s2658_s6 = sadd.s32 %s2953_s20, %s2653_s25  ;;  %p3449_p4 = scmp.lt.s32.totalorder %s2663_s29, %s3447_s3 }
 0x9bb   : > { %s2954_s19 = sshll.u32 %s2658_s6, 7  ;;  %p3450_p6 = scmp.lt.s32.totalorder %s3448_s22, %s3442_s15 }
 0x9bc   : > { %s2660_s1 = scalar_lea.hbm %s4259_s21, %s2954_s19 }
 0x9bd   : > { %p3451_p8 = por %p3450_p6, %p3449_p4 }
 0x9bf   : > { %p3452_p9 = pnand %p3451_p8, %p3445_p3 }
 0x9c1   : > { %3455 = shalt.err (!%p3452_p9)
}
 0x9c2   : > { %s3456_s0 = scalar_lea.hbm %s2660_s1, 128  ;;  %s3460_s27 = scalar_lea.hbm %s4260_s30, 512 }
 0x9c3   : > { %p3457_p7 = scmp.ne.s32.totalorder %s2660_s1, %s3456_s0  ;;  %p3461_p12 = scmp.lt.s32.totalorder %s2660_s1, %s4260_s30 }
 0x9c4   : > { %p3462_p13 = scmp.lt.s32.totalorder %s3460_s27, %s3456_s0 }
 0x9c5   : > { %p3458_p10 = pnand %p3457_p7, %p3693_p5 }
 0x9c6   : > { %p3463_p0 = por %p3462_p13, %p3461_p12 }
 0x9c7   : > { %p3459_p11 = pneg %p3458_p10 }
 0x9c9   : > { %p3464_p1 = pnand %p3463_p0, %p3459_p11 }
 0x9cb   : > { %3467 = shalt.err (!%p3464_p1)
}
 0x9cc   : > { %3252 = dma.vmem_to_hbm [thread:$0]  (%p3693_p5), %s2663_s29, 128, %s2660_s1, %s2637_s24  }
 0x9cd PF: > { %s4262_s2 = sld [smem:[#allocation25_spill]] }
 0x9ce   : > { %s4263_s3 = sld [smem:[#allocation19_spill]] }
 0x9cf   : > { %s4264_s20 = sld [smem:[#allocation28_spill]] }
 0x9d3   : > { %p3264_p2 = scmp.ge.s32.totalorder %s4262_s2, 2 }
 0x9d4   : > { %s2678_s6 = sand.u32 1, %s4263_s3  }
 0x9d5   : > { %p4265_p3 = scmp.ne.s32.totalorder %s4264_s20, 0  ;;  %s2679_s19 = scalar_lea.sflag [#allocation13], %s2678_s6 }
 0x9d7   : > { %p3259_p4 = pnand %p3264_p2, %p4265_p3 }
 0x9d9   : > { %p3260_p6 = pneg %p3259_p4 }
 0x9db   : > { %3507 = dma.done.wait (%p3260_p6), %s2679_s19, 128  }
 0x9dc   : > { %3509 = vsyncadd (%p3260_p6), %s2679_s19, 4294967168  ;;  %s35_s1 = sadd.s32 1, %s4262_s2   ;;  %s4266_s19 = sld [smem:[#allocation20_spill]] }
 0x9dd   : > { %p32_p8 = scmp.ge.s32.totalorder %s35_s1, 8   ;;  %s4267_s20 = sld [smem:[#allocation21_spill]] }
 0x9de   : > { %s4268_s21 = sld [smem:[#allocation29_spill]] }
 0x9df   : > { %s4269_s22 = sld [smem:[#allocation23_spill]]  ;;  %34 = sbr.rel (!%p32_p8) target bundleno = 16 (0x10), region = 166 }
 0x9e0   : > { %s4270_s0 = sld [smem:[#allocation24_spill]] }
 0x9e1   : > { %s4271_s23 = sld [smem:[#allocation26_spill]] }
 0x9e2   : > { %s4272_s24 = sld [smem:[#allocation27_spill]] }
 0x9e4   :  { %2696 = vsyncpa [#allocation12], 1 }
 0x9e5   :  { %2698 = vsyncpa [#allocation12 + $0x1], 1 }
 0x9e6   :  { %2699 = vsyncpa [#allocation13], 1 }
 0x9e7   :  { %2701 = vsyncpa [#allocation13 + $0x1], 1 }

</bundles_post_ra>
